<compile_context>
chip_gen: v7x
topology: tpu7x:2x2x1
jax: 0.10.0
libtpu: 0.0.40
codegen_flags: <defaults>
</compile_context>

<pallas_src>
import functools

import jax
import jax.numpy as jnp
import numpy as np
from jax.experimental import pallas as pl
from jax.experimental.pallas import tpu as pltpu

HP = 128                       # lane width (one f32 vreg of lanes)
ROWS_PER_LAYER = 2 * HP + 8    # per-layer slab rows: wih(128) + whh(128) + biases(8)


# ----------------------------------------------------------------------------
# Kernel: full forward in VMEM, no grid.
# ----------------------------------------------------------------------------
def _make_kernel(num_layers, seq_len, hidden):
    H = hidden
    h_lo = 2 * H                     # hidden state lives in the n-gate lanes 2H:3H

    def kernel(x_ref, gru_ref, head_ref, out_ref):
        lane = jax.lax.broadcasted_iota(jnp.int32, (1, HP), 1)
        hmask = ((lane >= h_lo) & (lane < h_lo + H)).astype(jnp.float32)

        def wih(l):
            base = l * ROWS_PER_LAYER
            return gru_ref[base:base + HP, :]                 # (128, 128)

        def whh(l):
            base = l * ROWS_PER_LAYER
            return gru_ref[base + HP:base + 2 * HP, :]        # (128, 128)

        bcomb, bhn = [], []
        for l in range(num_layers):
            base = l * ROWS_PER_LAYER + 2 * HP
            bcomb.append(gru_ref[base:base + 1, :])           # b_ih + b_hh(r,z); b_ih(n)
            bhn.append(gru_ref[base + 1:base + 2, :])         # b_hh(n) only (n lanes)

        # Hoisted layer-0 input projection: one (S,128)@(128,128) matmul.
        gi0 = jnp.dot(x_ref[...], wih(0), preferred_element_type=jnp.float32) + bcomb[0]

        def gru_cell(gi, gh, h):
            # PyTorch GRU (gate order r,z,n), gates packed along lanes
            # r:0:H | z:H:2H | n:2H:3H ; hidden state lives in lanes 2H:3H.
            #   r,z = sigmoid(gi_rz + gh_rz)
            #   n   = tanh(gi_n + r * gh_n)          (gh_n already includes b_hh_n)
            #   h'  = (1-z)*n + z*h
            rz = jax.nn.sigmoid(gi + gh)
            r_h = pltpu.roll(rz, shift=2 * H, axis=1)   # r -> h-home lanes (XLU)
            z_h = pltpu.roll(rz, shift=H, axis=1)       # z -> h-home lanes (XLU)
            n = jnp.tanh(gi + r_h * gh)
            return ((1.0 - z_h) * n + z_h * h) * hmask

        L, S = num_layers, seq_len
        h = [jnp.zeros((1, HP), jnp.float32) for _ in range(L)]
        carry = [None] * L         # layer-l output produced at the previous wavefront step
        feat_rows = []             # last-layer outputs, time order

        # Wavefront schedule: at step k, layer l processes t = k - l.  All
        # matmuls inside one step are mutually independent (the recurrent
        # inputs and the layer-(l) input come from the previous step).
        for k in range(S + L - 1):
            gi_k, gh_k = {}, {}
            for l in range(L):
                t = k - l
                if not 0 <= t < S:
                    continue
                gh_k[l] = jnp.dot(h[l], whh(l),
                                  preferred_element_type=jnp.float32) + bhn[l]
                if l == 0:
                    gi_k[l] = gi0[t:t + 1, :]
                else:
                    gi_k[l] = jnp.dot(carry[l - 1], wih(l),
                                      preferred_element_type=jnp.float32) + bcomb[l]
            new_carry = list(carry)
            for l in range(L):
                t = k - l
                if not 0 <= t < S:
                    continue
                h[l] = gru_cell(gi_k[l], gh_k[l], h[l])
                new_carry[l] = h[l]
                if l == L - 1:
                    feat_rows.append(h[l])
            carry = new_carry

        feat = jnp.concatenate(feat_rows, axis=0)      # (S, 128) == X[:, -1, :] padded

        # ---------------- Linear -> BatchNorm1d(train) -> ReLU head ----------
        # TODO(synk): BatchNorm1d running_mean/running_var buffer updates are
        # not modeled (normalization itself uses batch stats, as in training).
        def bn_train(y, gamma, beta):
            mean = jnp.mean(y, axis=0, keepdims=True)
            var = jnp.mean((y - mean) ** 2, axis=0, keepdims=True)   # biased var
            return (y - mean) * jax.lax.rsqrt(var + 1e-5) * gamma + beta

        w1 = head_ref[0:HP, :]
        b1 = head_ref[HP:HP + 1, :]
        g1 = head_ref[HP + 1:HP + 2, :]
        be1 = head_ref[HP + 2:HP + 3, :]
        w2 = head_ref[HP + 8:2 * HP + 8, :]
        b2 = head_ref[2 * HP + 8:2 * HP + 9, :]
        g2 = head_ref[2 * HP + 9:2 * HP + 10, :]
        be2 = head_ref[2 * HP + 10:2 * HP + 11, :]
        w3 = head_ref[2 * HP + 16:3 * HP + 16, :]
        b3 = head_ref[3 * HP + 16:3 * HP + 17, :]

        y = jnp.dot(feat, w1, preferred_element_type=jnp.float32) + b1
        y = jnp.maximum(bn_train(y, g1, be1), 0.0)
        y = jnp.dot(y, w2, preferred_element_type=jnp.float32) + b2
        y = jnp.maximum(bn_train(y, g2, be2), 0.0)
        # (S, 128) lane-dense output; real result in lane 0.
        out_ref[...] = jnp.dot(y, w3, preferred_element_type=jnp.float32) + b3

    return kernel


# ----------------------------------------------------------------------------
# Parameter init (deterministic, PyTorch-like uniform ranges / layouts).
# ----------------------------------------------------------------------------
def init_params(key, num_inputs, num_hiddens, num_layers):
    def uniform(k, shape, bound):
        return jax.random.uniform(k, shape, jnp.float32, -bound, bound)

    params = {"gru": [], "head": {}}
    kH = 1.0 / float(np.sqrt(num_hiddens))
    for l in range(num_layers):
        in_dim = num_inputs if l == 0 else num_hiddens
        key, k1, k2, k3, k4 = jax.random.split(key, 5)
        params["gru"].append({
            "w_ih": uniform(k1, (3 * num_hiddens, in_dim), kH),   # PyTorch (3H, in)
            "w_hh": uniform(k2, (3 * num_hiddens, num_hiddens), kH),
            "b_ih": uniform(k3, (3 * num_hiddens,), kH),
            "b_hh": uniform(k4, (3 * num_hiddens,), kH),
        })
    dims = [(num_hiddens, 128), (128, 32), (32, 1)]
    for i, (fin, fout) in enumerate(dims, start=1):
        key, kw, kb = jax.random.split(key, 3)
        b = 1.0 / float(np.sqrt(fin))
        params["head"][f"w{i}"] = uniform(kw, (fout, fin), b)     # PyTorch (out, in)
        params["head"][f"b{i}"] = uniform(kb, (fout,), b)
    for c, n in ((1, 128), (2, 32)):
        params["head"][f"g{c}"] = jnp.ones((n,), jnp.float32)     # BN weight
        params["head"][f"be{c}"] = jnp.zeros((n,), jnp.float32)   # BN bias
    return params


# ----------------------------------------------------------------------------
# One-time packing (call OUTSIDE the per-call jitted forward).
#   gru_slab : (L*264, 128) per layer = wih(128) | whh(128) | biases(8)
#              gates packed along lanes r|z|n in 0:H|H:2H|2H:3H; the hidden
#              state's "home" lanes are the n block (2H:3H), so whh / wih(l>0)
#              / head w1 have their real input rows at rows 2H:3H.
#              Bias row 0 = b_ih with b_hh(r,z) folded in; row 1 = b_hh(n).
#   head_slab: (408, 128)  w1(128)|b1,g1,be1(8)|w2(128)|b2,g2,be2(8)|w3(128)|b3(8)
# ----------------------------------------------------------------------------
def pack_params(params, num_inputs, num_hiddens, num_layers):
    H = num_hiddens
    G = 3 * H
    h_lo = 2 * H
    assert G <= HP and num_inputs <= HP

    def pad_to(a, rows, cols):
        return jnp.pad(a, ((0, rows - a.shape[0]), (0, cols - a.shape[1])))

    gru_blocks = []
    for l in range(num_layers):
        lp = params["gru"][l]
        w_ih_t = lp["w_ih"].T                       # (in_dim, 3H), gate cols r|z|n
        w_hh_t = lp["w_hh"].T                       # (H, 3H)
        if l > 0:                                   # input = prev layer's h (lanes 2H:3H)
            w_ih_t = jnp.pad(w_ih_t, ((h_lo, 0), (0, 0)))
        wih_p = pad_to(w_ih_t, HP, HP)
        whh_p = pad_to(jnp.pad(w_hh_t, ((h_lo, 0), (0, 0))), HP, HP)

        b_ih, b_hh = lp["b_ih"], lp["b_hh"]
        b_comb = jnp.concatenate([b_ih[:h_lo] + b_hh[:h_lo], b_ih[h_lo:]])   # (3H,)
        b_hn = jnp.pad(b_hh[h_lo:], (h_lo, 0))                                # (3H,)
        bias_blk = jnp.zeros((8, HP), jnp.float32)
        bias_blk = bias_blk.at[0, :G].set(b_comb).at[1, :G].set(b_hn)
        gru_blocks += [wih_p, whh_p, bias_blk]
    gru_slab = jnp.concatenate(gru_blocks, axis=0).astype(jnp.float32)

    hd = params["head"]

    def row_block(vecs):                            # list of 1-D vectors -> (8, 128)
        blk = jnp.zeros((8, HP), jnp.float32)
        for i, v in enumerate(vecs):
            blk = blk.at[i, :v.shape[0]].set(v)
        return blk

    w1p = pad_to(jnp.pad(hd["w1"].T, ((h_lo, 0), (0, 0))), HP, HP)  # in rows at 2H:3H
    w2p = pad_to(hd["w2"].T, HP, HP)
    w3p = pad_to(hd["w3"].T, HP, HP)
    head_slab = jnp.concatenate([
        w1p, row_block([hd["b1"], hd["g1"], hd["be1"]]),
        w2p, row_block([hd["b2"], hd["g2"], hd["be2"]]),
        w3p, row_block([hd["b3"]]),
    ], axis=0).astype(jnp.float32)
    return gru_slab, head_slab


# ----------------------------------------------------------------------------
# Jitted forward: per-call glue only (batch-row select + lane padding of x).
# ----------------------------------------------------------------------------
@functools.partial(jax.jit, static_argnames=("num_hiddens",))
def rnn_net_forward(x, gru_slab, head_slab, *, num_hiddens=32):
    S, B, I = x.shape
    num_layers = gru_slab.shape[0] // ROWS_PER_LAYER

    # Only batch row B-1 is consumed by the head; GRU batch rows are independent.
    x_feat = jnp.pad(x[:, B - 1, :].astype(jnp.float32), ((0, 0), (0, HP - I)))  # (S, 128)

    kernel = _make_kernel(num_layers, S, num_hiddens)
    out = pl.pallas_call(
        kernel,
        out_shape=jax.ShapeDtypeStruct((S, HP), jnp.float32),
        in_specs=[pl.BlockSpec(memory_space=pltpu.MemorySpace.VMEM)] * 3,
        out_specs=pl.BlockSpec(memory_space=pltpu.MemorySpace.VMEM),
    )(x_feat, gru_slab, head_slab)
    return out[:, 0]                                   # (S,) == .reshape(-1)


# ----------------------------------------------------------------------------
# Pure-JAX reference (mirrors the PyTorch module; f32, full matmul precision).
# ----------------------------------------------------------------------------
def _reference_forward(x, params):
    hp = jax.lax.Precision.HIGHEST
    S, B, _ = x.shape
    seq = x.astype(jnp.float32)
    for lp in params["gru"]:
        H = lp["w_hh"].shape[1]
        h = jnp.zeros((B, H), jnp.float32)
        outs = []
        for t in range(S):
            gi = jnp.dot(seq[t], lp["w_ih"].T, precision=hp) + lp["b_ih"]
            gh = jnp.dot(h, lp["w_hh"].T, precision=hp) + lp["b_hh"]
            r = jax.nn.sigmoid(gi[:, :H] + gh[:, :H])
            z = jax.nn.sigmoid(gi[:, H:2 * H] + gh[:, H:2 * H])
            n = jnp.tanh(gi[:, 2 * H:] + r * gh[:, 2 * H:])
            h = (1.0 - z) * n + z * h
            outs.append(h)
        seq = jnp.stack(outs, axis=0)
    feat = seq[:, -1, :]                               # (S, H)
    hd = params["head"]

    def bn(y, g, b):
        m = jnp.mean(y, axis=0, keepdims=True)
        v = jnp.mean((y - m) ** 2, axis=0, keepdims=True)
        return (y - m) * jax.lax.rsqrt(v + 1e-5) * g + b

    y = jnp.maximum(bn(jnp.dot(feat, hd["w1"].T, precision=hp) + hd["b1"],
                       hd["g1"], hd["be1"]), 0.0)
    y = jnp.maximum(bn(jnp.dot(y, hd["w2"].T, precision=hp) + hd["b2"],
                       hd["g2"], hd["be2"]), 0.0)
    return (jnp.dot(y, hd["w3"].T, precision=hp) + hd["b3"]).reshape(-1)


if __name__ == "__main__":
    # Small shapes implied by the forward: seq=8, batch=2, num_inputs=16,
    # num_hiddens=32, num_layers=2.
    S, B, I, H, L = 8, 2, 16, 32, 2
    key = jax.random.PRNGKey(0)
    kx, kp = jax.random.split(key)
    x = jax.random.normal(kx, (S, B, I), jnp.float32)
    params = init_params(kp, I, H, L)

    # One-time parameter packing, hoisted out of the jitted per-call path.
    gru_slab, head_slab = pack_params(params, I, H, L)

    y = rnn_net_forward(x, gru_slab, head_slab, num_hiddens=H)
    jax.block_until_ready(y)
    assert y.shape == (S,)

    # Correctness check against the pure-JAX mirror of the PyTorch module.
    y_ref = _reference_forward(x, params)
    np.testing.assert_allclose(np.asarray(y), np.asarray(y_ref), rtol=2e-3, atol=2e-3)
    print("KERNEL_OK")
</pallas_src>

<mosaic_0001>
module attributes {stable_mosaic.version = 11 : i64} {
  func.func @kernel(%arg0: memref<8x128xf32, #tpu.memory_space<vmem>>, %arg1: memref<528x128xf32, #tpu.memory_space<vmem>>, %arg2: memref<408x128xf32, #tpu.memory_space<vmem>>, %arg3: memref<8x128xf32, #tpu.memory_space<vmem>>) attributes {dimension_semantics = [], scalar_prefetch = 0 : i64, scratch_operands = 0 : i64, tpu.core_type = #tpu.core_type<tc>} {
    %0 = tpu.iota {dimensions = array<i32: 1>} : vector<1x128xi32>
    %c64_i32 = arith.constant 64 : i32
    %1 = vector.broadcast %c64_i32 : i32 to vector<1x128xi32>
    %2 = arith.cmpi sge, %0, %1 : vector<1x128xi32>
    %c96_i32 = arith.constant 96 : i32
    %3 = vector.broadcast %c96_i32 : i32 to vector<1x128xi32>
    %4 = arith.cmpi slt, %0, %3 : vector<1x128xi32>
    %5 = arith.andi %2, %4 : vector<1x128xi1>
    %6 = arith.extui %5 : vector<1x128xi1> to vector<1x128xi32>
    %7 = arith.sitofp %6 : vector<1x128xi32> to vector<1x128xf32>
    %c256 = arith.constant 256 : index
    %c0 = arith.constant 0 : index
    %8 = vector.load %arg1[%c256, %c0] : memref<528x128xf32, #tpu.memory_space<vmem>>, vector<1x128xf32>
    %c257 = arith.constant 257 : index
    %c0_0 = arith.constant 0 : index
    %9 = vector.load %arg1[%c257, %c0_0] : memref<528x128xf32, #tpu.memory_space<vmem>>, vector<1x128xf32>
    %c520 = arith.constant 520 : index
    %c0_1 = arith.constant 0 : index
    %10 = vector.load %arg1[%c520, %c0_1] : memref<528x128xf32, #tpu.memory_space<vmem>>, vector<1x128xf32>
    %c521 = arith.constant 521 : index
    %c0_2 = arith.constant 0 : index
    %11 = vector.load %arg1[%c521, %c0_2] : memref<528x128xf32, #tpu.memory_space<vmem>>, vector<1x128xf32>
    %c0_3 = arith.constant 0 : index
    %c0_4 = arith.constant 0 : index
    %12 = vector.load %arg0[%c0_3, %c0_4] : memref<8x128xf32, #tpu.memory_space<vmem>>, vector<8x128xf32>
    %c0_5 = arith.constant 0 : index
    %c0_6 = arith.constant 0 : index
    %13 = vector.load %arg1[%c0_5, %c0_6] : memref<528x128xf32, #tpu.memory_space<vmem>>, vector<128x128xf32>
    %cst = arith.constant dense<0.000000e+00> : vector<8x128xf32>
    %14 = tpu.matmul %12, %13, %cst {dimension_numbers = #tpu.dot_dimension_numbers<[1], [0], [0], [1], [0, 0, 1, 1], [], []>} : vector<8x128xf32>, vector<128x128xf32>, vector<8x128xf32> -> vector<8x128xf32>
    %15 = vector.broadcast %8 : vector<1x128xf32> to vector<8x128xf32>
    %16 = arith.addf %14, %15 : vector<8x128xf32>
    %cst_7 = arith.constant 0.000000e+00 : f32
    %17 = vector.broadcast %cst_7 : f32 to vector<1x128xf32>
    %cst_8 = arith.constant 0.000000e+00 : f32
    %18 = vector.broadcast %cst_8 : f32 to vector<1x128xf32>
    %c128 = arith.constant 128 : index
    %c0_9 = arith.constant 0 : index
    %19 = vector.load %arg1[%c128, %c0_9] : memref<528x128xf32, #tpu.memory_space<vmem>>, vector<128x128xf32>
    %cst_10 = arith.constant dense<0.000000e+00> : vector<1x128xf32>
    %20 = tpu.matmul %17, %19, %cst_10 {dimension_numbers = #tpu.dot_dimension_numbers<[1], [0], [0], [1], [0, 0, 1, 1], [], []>} : vector<1x128xf32>, vector<128x128xf32>, vector<1x128xf32> -> vector<1x128xf32>
    %21 = arith.addf %20, %9 : vector<1x128xf32>
    %22 = vector.extract_strided_slice %16 {offsets = [0, 0], sizes = [1, 128], strides = [1, 1]} : vector<8x128xf32> to vector<1x128xf32>
    %23 = arith.addf %22, %21 : vector<1x128xf32>
    %24 = arith.negf %23 : vector<1x128xf32>
    %25 = math.exp %24 : vector<1x128xf32>
    %cst_11 = arith.constant 1.000000e+00 : f32
    %26 = vector.broadcast %cst_11 : f32 to vector<1x128xf32>
    %27 = arith.addf %26, %25 : vector<1x128xf32>
    %28 = arith.divf %26, %27 : vector<1x128xf32>
    %c64_i32_12 = arith.constant 64 : i32
    %29 = tpu.dynamic_rotate %28 by %c64_i32_12 dim 1 : vector<1x128xf32>, i32 -> vector<1x128xf32>
    %c32_i32 = arith.constant 32 : i32
    %30 = tpu.dynamic_rotate %28 by %c32_i32 dim 1 : vector<1x128xf32>, i32 -> vector<1x128xf32>
    %31 = arith.mulf %29, %21 : vector<1x128xf32>
    %32 = arith.addf %22, %31 : vector<1x128xf32>
    %33 = math.tanh %32 : vector<1x128xf32>
    %cst_13 = arith.constant 1.000000e+00 : f32
    %34 = vector.broadcast %cst_13 : f32 to vector<1x128xf32>
    %35 = arith.subf %34, %30 : vector<1x128xf32>
    %36 = arith.mulf %35, %33 : vector<1x128xf32>
    %37 = arith.mulf %30, %17 : vector<1x128xf32>
    %38 = arith.addf %36, %37 : vector<1x128xf32>
    %39 = arith.mulf %38, %7 : vector<1x128xf32>
    %c128_14 = arith.constant 128 : index
    %c0_15 = arith.constant 0 : index
    %40 = vector.load %arg1[%c128_14, %c0_15] : memref<528x128xf32, #tpu.memory_space<vmem>>, vector<128x128xf32>
    %cst_16 = arith.constant dense<0.000000e+00> : vector<1x128xf32>
    %41 = tpu.matmul %39, %40, %cst_16 {dimension_numbers = #tpu.dot_dimension_numbers<[1], [0], [0], [1], [0, 0, 1, 1], [], []>} : vector<1x128xf32>, vector<128x128xf32>, vector<1x128xf32> -> vector<1x128xf32>
    %42 = arith.addf %41, %9 : vector<1x128xf32>
    %43 = vector.extract_strided_slice %16 {offsets = [1, 0], sizes = [1, 128], strides = [1, 1]} : vector<8x128xf32> to vector<1x128xf32>
    %c392 = arith.constant 392 : index
    %c0_17 = arith.constant 0 : index
    %44 = vector.load %arg1[%c392, %c0_17] : memref<528x128xf32, #tpu.memory_space<vmem>>, vector<128x128xf32>
    %cst_18 = arith.constant dense<0.000000e+00> : vector<1x128xf32>
    %45 = tpu.matmul %18, %44, %cst_18 {dimension_numbers = #tpu.dot_dimension_numbers<[1], [0], [0], [1], [0, 0, 1, 1], [], []>} : vector<1x128xf32>, vector<128x128xf32>, vector<1x128xf32> -> vector<1x128xf32>
    %46 = arith.addf %45, %11 : vector<1x128xf32>
    %c264 = arith.constant 264 : index
    %c0_19 = arith.constant 0 : index
    %47 = vector.load %arg1[%c264, %c0_19] : memref<528x128xf32, #tpu.memory_space<vmem>>, vector<128x128xf32>
    %cst_20 = arith.constant dense<0.000000e+00> : vector<1x128xf32>
    %48 = tpu.matmul %39, %47, %cst_20 {dimension_numbers = #tpu.dot_dimension_numbers<[1], [0], [0], [1], [0, 0, 1, 1], [], []>} : vector<1x128xf32>, vector<128x128xf32>, vector<1x128xf32> -> vector<1x128xf32>
    %49 = arith.addf %48, %10 : vector<1x128xf32>
    %50 = arith.addf %43, %42 : vector<1x128xf32>
    %51 = arith.negf %50 : vector<1x128xf32>
    %52 = math.exp %51 : vector<1x128xf32>
    %cst_21 = arith.constant 1.000000e+00 : f32
    %53 = vector.broadcast %cst_21 : f32 to vector<1x128xf32>
    %54 = arith.addf %53, %52 : vector<1x128xf32>
    %55 = arith.divf %53, %54 : vector<1x128xf32>
    %c64_i32_22 = arith.constant 64 : i32
    %56 = tpu.dynamic_rotate %55 by %c64_i32_22 dim 1 : vector<1x128xf32>, i32 -> vector<1x128xf32>
    %c32_i32_23 = arith.constant 32 : i32
    %57 = tpu.dynamic_rotate %55 by %c32_i32_23 dim 1 : vector<1x128xf32>, i32 -> vector<1x128xf32>
    %58 = arith.mulf %56, %42 : vector<1x128xf32>
    %59 = arith.addf %43, %58 : vector<1x128xf32>
    %60 = math.tanh %59 : vector<1x128xf32>
    %cst_24 = arith.constant 1.000000e+00 : f32
    %61 = vector.broadcast %cst_24 : f32 to vector<1x128xf32>
    %62 = arith.subf %61, %57 : vector<1x128xf32>
    %63 = arith.mulf %62, %60 : vector<1x128xf32>
    %64 = arith.mulf %57, %39 : vector<1x128xf32>
    %65 = arith.addf %63, %64 : vector<1x128xf32>
    %66 = arith.mulf %65, %7 : vector<1x128xf32>
    %67 = arith.addf %49, %46 : vector<1x128xf32>
    %68 = arith.negf %67 : vector<1x128xf32>
    %69 = math.exp %68 : vector<1x128xf32>
    %cst_25 = arith.constant 1.000000e+00 : f32
    %70 = vector.broadcast %cst_25 : f32 to vector<1x128xf32>
    %71 = arith.addf %70, %69 : vector<1x128xf32>
    %72 = arith.divf %70, %71 : vector<1x128xf32>
    %c64_i32_26 = arith.constant 64 : i32
    %73 = tpu.dynamic_rotate %72 by %c64_i32_26 dim 1 : vector<1x128xf32>, i32 -> vector<1x128xf32>
    %c32_i32_27 = arith.constant 32 : i32
    %74 = tpu.dynamic_rotate %72 by %c32_i32_27 dim 1 : vector<1x128xf32>, i32 -> vector<1x128xf32>
    %75 = arith.mulf %73, %46 : vector<1x128xf32>
    %76 = arith.addf %49, %75 : vector<1x128xf32>
    %77 = math.tanh %76 : vector<1x128xf32>
    %cst_28 = arith.constant 1.000000e+00 : f32
    %78 = vector.broadcast %cst_28 : f32 to vector<1x128xf32>
    %79 = arith.subf %78, %74 : vector<1x128xf32>
    %80 = arith.mulf %79, %77 : vector<1x128xf32>
    %81 = arith.mulf %74, %18 : vector<1x128xf32>
    %82 = arith.addf %80, %81 : vector<1x128xf32>
    %83 = arith.mulf %82, %7 : vector<1x128xf32>
    %c128_29 = arith.constant 128 : index
    %c0_30 = arith.constant 0 : index
    %84 = vector.load %arg1[%c128_29, %c0_30] : memref<528x128xf32, #tpu.memory_space<vmem>>, vector<128x128xf32>
    %cst_31 = arith.constant dense<0.000000e+00> : vector<1x128xf32>
    %85 = tpu.matmul %66, %84, %cst_31 {dimension_numbers = #tpu.dot_dimension_numbers<[1], [0], [0], [1], [0, 0, 1, 1], [], []>} : vector<1x128xf32>, vector<128x128xf32>, vector<1x128xf32> -> vector<1x128xf32>
    %86 = arith.addf %85, %9 : vector<1x128xf32>
    %87 = vector.extract_strided_slice %16 {offsets = [2, 0], sizes = [1, 128], strides = [1, 1]} : vector<8x128xf32> to vector<1x128xf32>
    %c392_32 = arith.constant 392 : index
    %c0_33 = arith.constant 0 : index
    %88 = vector.load %arg1[%c392_32, %c0_33] : memref<528x128xf32, #tpu.memory_space<vmem>>, vector<128x128xf32>
    %cst_34 = arith.constant dense<0.000000e+00> : vector<1x128xf32>
    %89 = tpu.matmul %83, %88, %cst_34 {dimension_numbers = #tpu.dot_dimension_numbers<[1], [0], [0], [1], [0, 0, 1, 1], [], []>} : vector<1x128xf32>, vector<128x128xf32>, vector<1x128xf32> -> vector<1x128xf32>
    %90 = arith.addf %89, %11 : vector<1x128xf32>
    %c264_35 = arith.constant 264 : index
    %c0_36 = arith.constant 0 : index
    %91 = vector.load %arg1[%c264_35, %c0_36] : memref<528x128xf32, #tpu.memory_space<vmem>>, vector<128x128xf32>
    %cst_37 = arith.constant dense<0.000000e+00> : vector<1x128xf32>
    %92 = tpu.matmul %66, %91, %cst_37 {dimension_numbers = #tpu.dot_dimension_numbers<[1], [0], [0], [1], [0, 0, 1, 1], [], []>} : vector<1x128xf32>, vector<128x128xf32>, vector<1x128xf32> -> vector<1x128xf32>
    %93 = arith.addf %92, %10 : vector<1x128xf32>
    %94 = arith.addf %87, %86 : vector<1x128xf32>
    %95 = arith.negf %94 : vector<1x128xf32>
    %96 = math.exp %95 : vector<1x128xf32>
    %cst_38 = arith.constant 1.000000e+00 : f32
    %97 = vector.broadcast %cst_38 : f32 to vector<1x128xf32>
    %98 = arith.addf %97, %96 : vector<1x128xf32>
    %99 = arith.divf %97, %98 : vector<1x128xf32>
    %c64_i32_39 = arith.constant 64 : i32
    %100 = tpu.dynamic_rotate %99 by %c64_i32_39 dim 1 : vector<1x128xf32>, i32 -> vector<1x128xf32>
    %c32_i32_40 = arith.constant 32 : i32
    %101 = tpu.dynamic_rotate %99 by %c32_i32_40 dim 1 : vector<1x128xf32>, i32 -> vector<1x128xf32>
    %102 = arith.mulf %100, %86 : vector<1x128xf32>
    %103 = arith.addf %87, %102 : vector<1x128xf32>
    %104 = math.tanh %103 : vector<1x128xf32>
    %cst_41 = arith.constant 1.000000e+00 : f32
    %105 = vector.broadcast %cst_41 : f32 to vector<1x128xf32>
    %106 = arith.subf %105, %101 : vector<1x128xf32>
    %107 = arith.mulf %106, %104 : vector<1x128xf32>
    %108 = arith.mulf %101, %66 : vector<1x128xf32>
    %109 = arith.addf %107, %108 : vector<1x128xf32>
    %110 = arith.mulf %109, %7 : vector<1x128xf32>
    %111 = arith.addf %93, %90 : vector<1x128xf32>
    %112 = arith.negf %111 : vector<1x128xf32>
    %113 = math.exp %112 : vector<1x128xf32>
    %cst_42 = arith.constant 1.000000e+00 : f32
    %114 = vector.broadcast %cst_42 : f32 to vector<1x128xf32>
    %115 = arith.addf %114, %113 : vector<1x128xf32>
    %116 = arith.divf %114, %115 : vector<1x128xf32>
    %c64_i32_43 = arith.constant 64 : i32
    %117 = tpu.dynamic_rotate %116 by %c64_i32_43 dim 1 : vector<1x128xf32>, i32 -> vector<1x128xf32>
    %c32_i32_44 = arith.constant 32 : i32
    %118 = tpu.dynamic_rotate %116 by %c32_i32_44 dim 1 : vector<1x128xf32>, i32 -> vector<1x128xf32>
    %119 = arith.mulf %117, %90 : vector<1x128xf32>
    %120 = arith.addf %93, %119 : vector<1x128xf32>
    %121 = math.tanh %120 : vector<1x128xf32>
    %cst_45 = arith.constant 1.000000e+00 : f32
    %122 = vector.broadcast %cst_45 : f32 to vector<1x128xf32>
    %123 = arith.subf %122, %118 : vector<1x128xf32>
    %124 = arith.mulf %123, %121 : vector<1x128xf32>
    %125 = arith.mulf %118, %83 : vector<1x128xf32>
    %126 = arith.addf %124, %125 : vector<1x128xf32>
    %127 = arith.mulf %126, %7 : vector<1x128xf32>
    %c128_46 = arith.constant 128 : index
    %c0_47 = arith.constant 0 : index
    %128 = vector.load %arg1[%c128_46, %c0_47] : memref<528x128xf32, #tpu.memory_space<vmem>>, vector<128x128xf32>
    %cst_48 = arith.constant dense<0.000000e+00> : vector<1x128xf32>
    %129 = tpu.matmul %110, %128, %cst_48 {dimension_numbers = #tpu.dot_dimension_numbers<[1], [0], [0], [1], [0, 0, 1, 1], [], []>} : vector<1x128xf32>, vector<128x128xf32>, vector<1x128xf32> -> vector<1x128xf32>
    %130 = arith.addf %129, %9 : vector<1x128xf32>
    %131 = vector.extract_strided_slice %16 {offsets = [3, 0], sizes = [1, 128], strides = [1, 1]} : vector<8x128xf32> to vector<1x128xf32>
    %c392_49 = arith.constant 392 : index
    %c0_50 = arith.constant 0 : index
    %132 = vector.load %arg1[%c392_49, %c0_50] : memref<528x128xf32, #tpu.memory_space<vmem>>, vector<128x128xf32>
    %cst_51 = arith.constant dense<0.000000e+00> : vector<1x128xf32>
    %133 = tpu.matmul %127, %132, %cst_51 {dimension_numbers = #tpu.dot_dimension_numbers<[1], [0], [0], [1], [0, 0, 1, 1], [], []>} : vector<1x128xf32>, vector<128x128xf32>, vector<1x128xf32> -> vector<1x128xf32>
    %134 = arith.addf %133, %11 : vector<1x128xf32>
    %c264_52 = arith.constant 264 : index
    %c0_53 = arith.constant 0 : index
    %135 = vector.load %arg1[%c264_52, %c0_53] : memref<528x128xf32, #tpu.memory_space<vmem>>, vector<128x128xf32>
    %cst_54 = arith.constant dense<0.000000e+00> : vector<1x128xf32>
    %136 = tpu.matmul %110, %135, %cst_54 {dimension_numbers = #tpu.dot_dimension_numbers<[1], [0], [0], [1], [0, 0, 1, 1], [], []>} : vector<1x128xf32>, vector<128x128xf32>, vector<1x128xf32> -> vector<1x128xf32>
    %137 = arith.addf %136, %10 : vector<1x128xf32>
    %138 = arith.addf %131, %130 : vector<1x128xf32>
    %139 = arith.negf %138 : vector<1x128xf32>
    %140 = math.exp %139 : vector<1x128xf32>
    %cst_55 = arith.constant 1.000000e+00 : f32
    %141 = vector.broadcast %cst_55 : f32 to vector<1x128xf32>
    %142 = arith.addf %141, %140 : vector<1x128xf32>
    %143 = arith.divf %141, %142 : vector<1x128xf32>
    %c64_i32_56 = arith.constant 64 : i32
    %144 = tpu.dynamic_rotate %143 by %c64_i32_56 dim 1 : vector<1x128xf32>, i32 -> vector<1x128xf32>
    %c32_i32_57 = arith.constant 32 : i32
    %145 = tpu.dynamic_rotate %143 by %c32_i32_57 dim 1 : vector<1x128xf32>, i32 -> vector<1x128xf32>
    %146 = arith.mulf %144, %130 : vector<1x128xf32>
    %147 = arith.addf %131, %146 : vector<1x128xf32>
    %148 = math.tanh %147 : vector<1x128xf32>
    %cst_58 = arith.constant 1.000000e+00 : f32
    %149 = vector.broadcast %cst_58 : f32 to vector<1x128xf32>
    %150 = arith.subf %149, %145 : vector<1x128xf32>
    %151 = arith.mulf %150, %148 : vector<1x128xf32>
    %152 = arith.mulf %145, %110 : vector<1x128xf32>
    %153 = arith.addf %151, %152 : vector<1x128xf32>
    %154 = arith.mulf %153, %7 : vector<1x128xf32>
    %155 = arith.addf %137, %134 : vector<1x128xf32>
    %156 = arith.negf %155 : vector<1x128xf32>
    %157 = math.exp %156 : vector<1x128xf32>
    %cst_59 = arith.constant 1.000000e+00 : f32
    %158 = vector.broadcast %cst_59 : f32 to vector<1x128xf32>
    %159 = arith.addf %158, %157 : vector<1x128xf32>
    %160 = arith.divf %158, %159 : vector<1x128xf32>
    %c64_i32_60 = arith.constant 64 : i32
    %161 = tpu.dynamic_rotate %160 by %c64_i32_60 dim 1 : vector<1x128xf32>, i32 -> vector<1x128xf32>
    %c32_i32_61 = arith.constant 32 : i32
    %162 = tpu.dynamic_rotate %160 by %c32_i32_61 dim 1 : vector<1x128xf32>, i32 -> vector<1x128xf32>
    %163 = arith.mulf %161, %134 : vector<1x128xf32>
    %164 = arith.addf %137, %163 : vector<1x128xf32>
    %165 = math.tanh %164 : vector<1x128xf32>
    %cst_62 = arith.constant 1.000000e+00 : f32
    %166 = vector.broadcast %cst_62 : f32 to vector<1x128xf32>
    %167 = arith.subf %166, %162 : vector<1x128xf32>
    %168 = arith.mulf %167, %165 : vector<1x128xf32>
    %169 = arith.mulf %162, %127 : vector<1x128xf32>
    %170 = arith.addf %168, %169 : vector<1x128xf32>
    %171 = arith.mulf %170, %7 : vector<1x128xf32>
    %c128_63 = arith.constant 128 : index
    %c0_64 = arith.constant 0 : index
    %172 = vector.load %arg1[%c128_63, %c0_64] : memref<528x128xf32, #tpu.memory_space<vmem>>, vector<128x128xf32>
    %cst_65 = arith.constant dense<0.000000e+00> : vector<1x128xf32>
    %173 = tpu.matmul %154, %172, %cst_65 {dimension_numbers = #tpu.dot_dimension_numbers<[1], [0], [0], [1], [0, 0, 1, 1], [], []>} : vector<1x128xf32>, vector<128x128xf32>, vector<1x128xf32> -> vector<1x128xf32>
    %174 = arith.addf %173, %9 : vector<1x128xf32>
    %175 = vector.extract_strided_slice %16 {offsets = [4, 0], sizes = [1, 128], strides = [1, 1]} : vector<8x128xf32> to vector<1x128xf32>
    %c392_66 = arith.constant 392 : index
    %c0_67 = arith.constant 0 : index
    %176 = vector.load %arg1[%c392_66, %c0_67] : memref<528x128xf32, #tpu.memory_space<vmem>>, vector<128x128xf32>
    %cst_68 = arith.constant dense<0.000000e+00> : vector<1x128xf32>
    %177 = tpu.matmul %171, %176, %cst_68 {dimension_numbers = #tpu.dot_dimension_numbers<[1], [0], [0], [1], [0, 0, 1, 1], [], []>} : vector<1x128xf32>, vector<128x128xf32>, vector<1x128xf32> -> vector<1x128xf32>
    %178 = arith.addf %177, %11 : vector<1x128xf32>
    %c264_69 = arith.constant 264 : index
    %c0_70 = arith.constant 0 : index
    %179 = vector.load %arg1[%c264_69, %c0_70] : memref<528x128xf32, #tpu.memory_space<vmem>>, vector<128x128xf32>
    %cst_71 = arith.constant dense<0.000000e+00> : vector<1x128xf32>
    %180 = tpu.matmul %154, %179, %cst_71 {dimension_numbers = #tpu.dot_dimension_numbers<[1], [0], [0], [1], [0, 0, 1, 1], [], []>} : vector<1x128xf32>, vector<128x128xf32>, vector<1x128xf32> -> vector<1x128xf32>
    %181 = arith.addf %180, %10 : vector<1x128xf32>
    %182 = arith.addf %175, %174 : vector<1x128xf32>
    %183 = arith.negf %182 : vector<1x128xf32>
    %184 = math.exp %183 : vector<1x128xf32>
    %cst_72 = arith.constant 1.000000e+00 : f32
    %185 = vector.broadcast %cst_72 : f32 to vector<1x128xf32>
    %186 = arith.addf %185, %184 : vector<1x128xf32>
    %187 = arith.divf %185, %186 : vector<1x128xf32>
    %c64_i32_73 = arith.constant 64 : i32
    %188 = tpu.dynamic_rotate %187 by %c64_i32_73 dim 1 : vector<1x128xf32>, i32 -> vector<1x128xf32>
    %c32_i32_74 = arith.constant 32 : i32
    %189 = tpu.dynamic_rotate %187 by %c32_i32_74 dim 1 : vector<1x128xf32>, i32 -> vector<1x128xf32>
    %190 = arith.mulf %188, %174 : vector<1x128xf32>
    %191 = arith.addf %175, %190 : vector<1x128xf32>
    %192 = math.tanh %191 : vector<1x128xf32>
    %cst_75 = arith.constant 1.000000e+00 : f32
    %193 = vector.broadcast %cst_75 : f32 to vector<1x128xf32>
    %194 = arith.subf %193, %189 : vector<1x128xf32>
    %195 = arith.mulf %194, %192 : vector<1x128xf32>
    %196 = arith.mulf %189, %154 : vector<1x128xf32>
    %197 = arith.addf %195, %196 : vector<1x128xf32>
    %198 = arith.mulf %197, %7 : vector<1x128xf32>
    %199 = arith.addf %181, %178 : vector<1x128xf32>
    %200 = arith.negf %199 : vector<1x128xf32>
    %201 = math.exp %200 : vector<1x128xf32>
    %cst_76 = arith.constant 1.000000e+00 : f32
    %202 = vector.broadcast %cst_76 : f32 to vector<1x128xf32>
    %203 = arith.addf %202, %201 : vector<1x128xf32>
    %204 = arith.divf %202, %203 : vector<1x128xf32>
    %c64_i32_77 = arith.constant 64 : i32
    %205 = tpu.dynamic_rotate %204 by %c64_i32_77 dim 1 : vector<1x128xf32>, i32 -> vector<1x128xf32>
    %c32_i32_78 = arith.constant 32 : i32
    %206 = tpu.dynamic_rotate %204 by %c32_i32_78 dim 1 : vector<1x128xf32>, i32 -> vector<1x128xf32>
    %207 = arith.mulf %205, %178 : vector<1x128xf32>
    %208 = arith.addf %181, %207 : vector<1x128xf32>
    %209 = math.tanh %208 : vector<1x128xf32>
    %cst_79 = arith.constant 1.000000e+00 : f32
    %210 = vector.broadcast %cst_79 : f32 to vector<1x128xf32>
    %211 = arith.subf %210, %206 : vector<1x128xf32>
    %212 = arith.mulf %211, %209 : vector<1x128xf32>
    %213 = arith.mulf %206, %171 : vector<1x128xf32>
    %214 = arith.addf %212, %213 : vector<1x128xf32>
    %215 = arith.mulf %214, %7 : vector<1x128xf32>
    %c128_80 = arith.constant 128 : index
    %c0_81 = arith.constant 0 : index
    %216 = vector.load %arg1[%c128_80, %c0_81] : memref<528x128xf32, #tpu.memory_space<vmem>>, vector<128x128xf32>
    %cst_82 = arith.constant dense<0.000000e+00> : vector<1x128xf32>
    %217 = tpu.matmul %198, %216, %cst_82 {dimension_numbers = #tpu.dot_dimension_numbers<[1], [0], [0], [1], [0, 0, 1, 1], [], []>} : vector<1x128xf32>, vector<128x128xf32>, vector<1x128xf32> -> vector<1x128xf32>
    %218 = arith.addf %217, %9 : vector<1x128xf32>
    %219 = vector.extract_strided_slice %16 {offsets = [5, 0], sizes = [1, 128], strides = [1, 1]} : vector<8x128xf32> to vector<1x128xf32>
    %c392_83 = arith.constant 392 : index
    %c0_84 = arith.constant 0 : index
    %220 = vector.load %arg1[%c392_83, %c0_84] : memref<528x128xf32, #tpu.memory_space<vmem>>, vector<128x128xf32>
    %cst_85 = arith.constant dense<0.000000e+00> : vector<1x128xf32>
    %221 = tpu.matmul %215, %220, %cst_85 {dimension_numbers = #tpu.dot_dimension_numbers<[1], [0], [0], [1], [0, 0, 1, 1], [], []>} : vector<1x128xf32>, vector<128x128xf32>, vector<1x128xf32> -> vector<1x128xf32>
    %222 = arith.addf %221, %11 : vector<1x128xf32>
    %c264_86 = arith.constant 264 : index
    %c0_87 = arith.constant 0 : index
    %223 = vector.load %arg1[%c264_86, %c0_87] : memref<528x128xf32, #tpu.memory_space<vmem>>, vector<128x128xf32>
    %cst_88 = arith.constant dense<0.000000e+00> : vector<1x128xf32>
    %224 = tpu.matmul %198, %223, %cst_88 {dimension_numbers = #tpu.dot_dimension_numbers<[1], [0], [0], [1], [0, 0, 1, 1], [], []>} : vector<1x128xf32>, vector<128x128xf32>, vector<1x128xf32> -> vector<1x128xf32>
    %225 = arith.addf %224, %10 : vector<1x128xf32>
    %226 = arith.addf %219, %218 : vector<1x128xf32>
    %227 = arith.negf %226 : vector<1x128xf32>
    %228 = math.exp %227 : vector<1x128xf32>
    %cst_89 = arith.constant 1.000000e+00 : f32
    %229 = vector.broadcast %cst_89 : f32 to vector<1x128xf32>
    %230 = arith.addf %229, %228 : vector<1x128xf32>
    %231 = arith.divf %229, %230 : vector<1x128xf32>
    %c64_i32_90 = arith.constant 64 : i32
    %232 = tpu.dynamic_rotate %231 by %c64_i32_90 dim 1 : vector<1x128xf32>, i32 -> vector<1x128xf32>
    %c32_i32_91 = arith.constant 32 : i32
    %233 = tpu.dynamic_rotate %231 by %c32_i32_91 dim 1 : vector<1x128xf32>, i32 -> vector<1x128xf32>
    %234 = arith.mulf %232, %218 : vector<1x128xf32>
    %235 = arith.addf %219, %234 : vector<1x128xf32>
    %236 = math.tanh %235 : vector<1x128xf32>
    %cst_92 = arith.constant 1.000000e+00 : f32
    %237 = vector.broadcast %cst_92 : f32 to vector<1x128xf32>
    %238 = arith.subf %237, %233 : vector<1x128xf32>
    %239 = arith.mulf %238, %236 : vector<1x128xf32>
    %240 = arith.mulf %233, %198 : vector<1x128xf32>
    %241 = arith.addf %239, %240 : vector<1x128xf32>
    %242 = arith.mulf %241, %7 : vector<1x128xf32>
    %243 = arith.addf %225, %222 : vector<1x128xf32>
    %244 = arith.negf %243 : vector<1x128xf32>
    %245 = math.exp %244 : vector<1x128xf32>
    %cst_93 = arith.constant 1.000000e+00 : f32
    %246 = vector.broadcast %cst_93 : f32 to vector<1x128xf32>
    %247 = arith.addf %246, %245 : vector<1x128xf32>
    %248 = arith.divf %246, %247 : vector<1x128xf32>
    %c64_i32_94 = arith.constant 64 : i32
    %249 = tpu.dynamic_rotate %248 by %c64_i32_94 dim 1 : vector<1x128xf32>, i32 -> vector<1x128xf32>
    %c32_i32_95 = arith.constant 32 : i32
    %250 = tpu.dynamic_rotate %248 by %c32_i32_95 dim 1 : vector<1x128xf32>, i32 -> vector<1x128xf32>
    %251 = arith.mulf %249, %222 : vector<1x128xf32>
    %252 = arith.addf %225, %251 : vector<1x128xf32>
    %253 = math.tanh %252 : vector<1x128xf32>
    %cst_96 = arith.constant 1.000000e+00 : f32
    %254 = vector.broadcast %cst_96 : f32 to vector<1x128xf32>
    %255 = arith.subf %254, %250 : vector<1x128xf32>
    %256 = arith.mulf %255, %253 : vector<1x128xf32>
    %257 = arith.mulf %250, %215 : vector<1x128xf32>
    %258 = arith.addf %256, %257 : vector<1x128xf32>
    %259 = arith.mulf %258, %7 : vector<1x128xf32>
    %c128_97 = arith.constant 128 : index
    %c0_98 = arith.constant 0 : index
    %260 = vector.load %arg1[%c128_97, %c0_98] : memref<528x128xf32, #tpu.memory_space<vmem>>, vector<128x128xf32>
    %cst_99 = arith.constant dense<0.000000e+00> : vector<1x128xf32>
    %261 = tpu.matmul %242, %260, %cst_99 {dimension_numbers = #tpu.dot_dimension_numbers<[1], [0], [0], [1], [0, 0, 1, 1], [], []>} : vector<1x128xf32>, vector<128x128xf32>, vector<1x128xf32> -> vector<1x128xf32>
    %262 = arith.addf %261, %9 : vector<1x128xf32>
    %263 = vector.extract_strided_slice %16 {offsets = [6, 0], sizes = [1, 128], strides = [1, 1]} : vector<8x128xf32> to vector<1x128xf32>
    %c392_100 = arith.constant 392 : index
    %c0_101 = arith.constant 0 : index
    %264 = vector.load %arg1[%c392_100, %c0_101] : memref<528x128xf32, #tpu.memory_space<vmem>>, vector<128x128xf32>
    %cst_102 = arith.constant dense<0.000000e+00> : vector<1x128xf32>
    %265 = tpu.matmul %259, %264, %cst_102 {dimension_numbers = #tpu.dot_dimension_numbers<[1], [0], [0], [1], [0, 0, 1, 1], [], []>} : vector<1x128xf32>, vector<128x128xf32>, vector<1x128xf32> -> vector<1x128xf32>
    %266 = arith.addf %265, %11 : vector<1x128xf32>
    %c264_103 = arith.constant 264 : index
    %c0_104 = arith.constant 0 : index
    %267 = vector.load %arg1[%c264_103, %c0_104] : memref<528x128xf32, #tpu.memory_space<vmem>>, vector<128x128xf32>
    %cst_105 = arith.constant dense<0.000000e+00> : vector<1x128xf32>
    %268 = tpu.matmul %242, %267, %cst_105 {dimension_numbers = #tpu.dot_dimension_numbers<[1], [0], [0], [1], [0, 0, 1, 1], [], []>} : vector<1x128xf32>, vector<128x128xf32>, vector<1x128xf32> -> vector<1x128xf32>
    %269 = arith.addf %268, %10 : vector<1x128xf32>
    %270 = arith.addf %263, %262 : vector<1x128xf32>
    %271 = arith.negf %270 : vector<1x128xf32>
    %272 = math.exp %271 : vector<1x128xf32>
    %cst_106 = arith.constant 1.000000e+00 : f32
    %273 = vector.broadcast %cst_106 : f32 to vector<1x128xf32>
    %274 = arith.addf %273, %272 : vector<1x128xf32>
    %275 = arith.divf %273, %274 : vector<1x128xf32>
    %c64_i32_107 = arith.constant 64 : i32
    %276 = tpu.dynamic_rotate %275 by %c64_i32_107 dim 1 : vector<1x128xf32>, i32 -> vector<1x128xf32>
    %c32_i32_108 = arith.constant 32 : i32
    %277 = tpu.dynamic_rotate %275 by %c32_i32_108 dim 1 : vector<1x128xf32>, i32 -> vector<1x128xf32>
    %278 = arith.mulf %276, %262 : vector<1x128xf32>
    %279 = arith.addf %263, %278 : vector<1x128xf32>
    %280 = math.tanh %279 : vector<1x128xf32>
    %cst_109 = arith.constant 1.000000e+00 : f32
    %281 = vector.broadcast %cst_109 : f32 to vector<1x128xf32>
    %282 = arith.subf %281, %277 : vector<1x128xf32>
    %283 = arith.mulf %282, %280 : vector<1x128xf32>
    %284 = arith.mulf %277, %242 : vector<1x128xf32>
    %285 = arith.addf %283, %284 : vector<1x128xf32>
    %286 = arith.mulf %285, %7 : vector<1x128xf32>
    %287 = arith.addf %269, %266 : vector<1x128xf32>
    %288 = arith.negf %287 : vector<1x128xf32>
    %289 = math.exp %288 : vector<1x128xf32>
    %cst_110 = arith.constant 1.000000e+00 : f32
    %290 = vector.broadcast %cst_110 : f32 to vector<1x128xf32>
    %291 = arith.addf %290, %289 : vector<1x128xf32>
    %292 = arith.divf %290, %291 : vector<1x128xf32>
    %c64_i32_111 = arith.constant 64 : i32
    %293 = tpu.dynamic_rotate %292 by %c64_i32_111 dim 1 : vector<1x128xf32>, i32 -> vector<1x128xf32>
    %c32_i32_112 = arith.constant 32 : i32
    %294 = tpu.dynamic_rotate %292 by %c32_i32_112 dim 1 : vector<1x128xf32>, i32 -> vector<1x128xf32>
    %295 = arith.mulf %293, %266 : vector<1x128xf32>
    %296 = arith.addf %269, %295 : vector<1x128xf32>
    %297 = math.tanh %296 : vector<1x128xf32>
    %cst_113 = arith.constant 1.000000e+00 : f32
    %298 = vector.broadcast %cst_113 : f32 to vector<1x128xf32>
    %299 = arith.subf %298, %294 : vector<1x128xf32>
    %300 = arith.mulf %299, %297 : vector<1x128xf32>
    %301 = arith.mulf %294, %259 : vector<1x128xf32>
    %302 = arith.addf %300, %301 : vector<1x128xf32>
    %303 = arith.mulf %302, %7 : vector<1x128xf32>
    %c128_114 = arith.constant 128 : index
    %c0_115 = arith.constant 0 : index
    %304 = vector.load %arg1[%c128_114, %c0_115] : memref<528x128xf32, #tpu.memory_space<vmem>>, vector<128x128xf32>
    %cst_116 = arith.constant dense<0.000000e+00> : vector<1x128xf32>
    %305 = tpu.matmul %286, %304, %cst_116 {dimension_numbers = #tpu.dot_dimension_numbers<[1], [0], [0], [1], [0, 0, 1, 1], [], []>} : vector<1x128xf32>, vector<128x128xf32>, vector<1x128xf32> -> vector<1x128xf32>
    %306 = arith.addf %305, %9 : vector<1x128xf32>
    %307 = vector.extract_strided_slice %16 {offsets = [7, 0], sizes = [1, 128], strides = [1, 1]} : vector<8x128xf32> to vector<1x128xf32>
    %c392_117 = arith.constant 392 : index
    %c0_118 = arith.constant 0 : index
    %308 = vector.load %arg1[%c392_117, %c0_118] : memref<528x128xf32, #tpu.memory_space<vmem>>, vector<128x128xf32>
    %cst_119 = arith.constant dense<0.000000e+00> : vector<1x128xf32>
    %309 = tpu.matmul %303, %308, %cst_119 {dimension_numbers = #tpu.dot_dimension_numbers<[1], [0], [0], [1], [0, 0, 1, 1], [], []>} : vector<1x128xf32>, vector<128x128xf32>, vector<1x128xf32> -> vector<1x128xf32>
    %310 = arith.addf %309, %11 : vector<1x128xf32>
    %c264_120 = arith.constant 264 : index
    %c0_121 = arith.constant 0 : index
    %311 = vector.load %arg1[%c264_120, %c0_121] : memref<528x128xf32, #tpu.memory_space<vmem>>, vector<128x128xf32>
    %cst_122 = arith.constant dense<0.000000e+00> : vector<1x128xf32>
    %312 = tpu.matmul %286, %311, %cst_122 {dimension_numbers = #tpu.dot_dimension_numbers<[1], [0], [0], [1], [0, 0, 1, 1], [], []>} : vector<1x128xf32>, vector<128x128xf32>, vector<1x128xf32> -> vector<1x128xf32>
    %313 = arith.addf %312, %10 : vector<1x128xf32>
    %314 = arith.addf %307, %306 : vector<1x128xf32>
    %315 = arith.negf %314 : vector<1x128xf32>
    %316 = math.exp %315 : vector<1x128xf32>
    %cst_123 = arith.constant 1.000000e+00 : f32
    %317 = vector.broadcast %cst_123 : f32 to vector<1x128xf32>
    %318 = arith.addf %317, %316 : vector<1x128xf32>
    %319 = arith.divf %317, %318 : vector<1x128xf32>
    %c64_i32_124 = arith.constant 64 : i32
    %320 = tpu.dynamic_rotate %319 by %c64_i32_124 dim 1 : vector<1x128xf32>, i32 -> vector<1x128xf32>
    %c32_i32_125 = arith.constant 32 : i32
    %321 = tpu.dynamic_rotate %319 by %c32_i32_125 dim 1 : vector<1x128xf32>, i32 -> vector<1x128xf32>
    %322 = arith.mulf %320, %306 : vector<1x128xf32>
    %323 = arith.addf %307, %322 : vector<1x128xf32>
    %324 = math.tanh %323 : vector<1x128xf32>
    %cst_126 = arith.constant 1.000000e+00 : f32
    %325 = vector.broadcast %cst_126 : f32 to vector<1x128xf32>
    %326 = arith.subf %325, %321 : vector<1x128xf32>
    %327 = arith.mulf %326, %324 : vector<1x128xf32>
    %328 = arith.mulf %321, %286 : vector<1x128xf32>
    %329 = arith.addf %327, %328 : vector<1x128xf32>
    %330 = arith.mulf %329, %7 : vector<1x128xf32>
    %331 = arith.addf %313, %310 : vector<1x128xf32>
    %332 = arith.negf %331 : vector<1x128xf32>
    %333 = math.exp %332 : vector<1x128xf32>
    %cst_127 = arith.constant 1.000000e+00 : f32
    %334 = vector.broadcast %cst_127 : f32 to vector<1x128xf32>
    %335 = arith.addf %334, %333 : vector<1x128xf32>
    %336 = arith.divf %334, %335 : vector<1x128xf32>
    %c64_i32_128 = arith.constant 64 : i32
    %337 = tpu.dynamic_rotate %336 by %c64_i32_128 dim 1 : vector<1x128xf32>, i32 -> vector<1x128xf32>
    %c32_i32_129 = arith.constant 32 : i32
    %338 = tpu.dynamic_rotate %336 by %c32_i32_129 dim 1 : vector<1x128xf32>, i32 -> vector<1x128xf32>
    %339 = arith.mulf %337, %310 : vector<1x128xf32>
    %340 = arith.addf %313, %339 : vector<1x128xf32>
    %341 = math.tanh %340 : vector<1x128xf32>
    %cst_130 = arith.constant 1.000000e+00 : f32
    %342 = vector.broadcast %cst_130 : f32 to vector<1x128xf32>
    %343 = arith.subf %342, %338 : vector<1x128xf32>
    %344 = arith.mulf %343, %341 : vector<1x128xf32>
    %345 = arith.mulf %338, %303 : vector<1x128xf32>
    %346 = arith.addf %344, %345 : vector<1x128xf32>
    %347 = arith.mulf %346, %7 : vector<1x128xf32>
    %c392_131 = arith.constant 392 : index
    %c0_132 = arith.constant 0 : index
    %348 = vector.load %arg1[%c392_131, %c0_132] : memref<528x128xf32, #tpu.memory_space<vmem>>, vector<128x128xf32>
    %cst_133 = arith.constant dense<0.000000e+00> : vector<1x128xf32>
    %349 = tpu.matmul %347, %348, %cst_133 {dimension_numbers = #tpu.dot_dimension_numbers<[1], [0], [0], [1], [0, 0, 1, 1], [], []>} : vector<1x128xf32>, vector<128x128xf32>, vector<1x128xf32> -> vector<1x128xf32>
    %350 = arith.addf %349, %11 : vector<1x128xf32>
    %c264_134 = arith.constant 264 : index
    %c0_135 = arith.constant 0 : index
    %351 = vector.load %arg1[%c264_134, %c0_135] : memref<528x128xf32, #tpu.memory_space<vmem>>, vector<128x128xf32>
    %cst_136 = arith.constant dense<0.000000e+00> : vector<1x128xf32>
    %352 = tpu.matmul %330, %351, %cst_136 {dimension_numbers = #tpu.dot_dimension_numbers<[1], [0], [0], [1], [0, 0, 1, 1], [], []>} : vector<1x128xf32>, vector<128x128xf32>, vector<1x128xf32> -> vector<1x128xf32>
    %353 = arith.addf %352, %10 : vector<1x128xf32>
    %354 = arith.addf %353, %350 : vector<1x128xf32>
    %355 = arith.negf %354 : vector<1x128xf32>
    %356 = math.exp %355 : vector<1x128xf32>
    %cst_137 = arith.constant 1.000000e+00 : f32
    %357 = vector.broadcast %cst_137 : f32 to vector<1x128xf32>
    %358 = arith.addf %357, %356 : vector<1x128xf32>
    %359 = arith.divf %357, %358 : vector<1x128xf32>
    %c64_i32_138 = arith.constant 64 : i32
    %360 = tpu.dynamic_rotate %359 by %c64_i32_138 dim 1 : vector<1x128xf32>, i32 -> vector<1x128xf32>
    %c32_i32_139 = arith.constant 32 : i32
    %361 = tpu.dynamic_rotate %359 by %c32_i32_139 dim 1 : vector<1x128xf32>, i32 -> vector<1x128xf32>
    %362 = arith.mulf %360, %350 : vector<1x128xf32>
    %363 = arith.addf %353, %362 : vector<1x128xf32>
    %364 = math.tanh %363 : vector<1x128xf32>
    %cst_140 = arith.constant 1.000000e+00 : f32
    %365 = vector.broadcast %cst_140 : f32 to vector<1x128xf32>
    %366 = arith.subf %365, %361 : vector<1x128xf32>
    %367 = arith.mulf %366, %364 : vector<1x128xf32>
    %368 = arith.mulf %361, %347 : vector<1x128xf32>
    %369 = arith.addf %367, %368 : vector<1x128xf32>
    %370 = arith.mulf %369, %7 : vector<1x128xf32>
    %371 = tpu.concatenate %83, %127, %171, %215, %259, %303, %347, %370 in 0 : vector<1x128xf32>, vector<1x128xf32>, vector<1x128xf32>, vector<1x128xf32>, vector<1x128xf32>, vector<1x128xf32>, vector<1x128xf32>, vector<1x128xf32> -> vector<8x128xf32>
    %c0_141 = arith.constant 0 : index
    %c0_142 = arith.constant 0 : index
    %372 = vector.load %arg2[%c0_141, %c0_142] : memref<408x128xf32, #tpu.memory_space<vmem>>, vector<128x128xf32>
    %c128_143 = arith.constant 128 : index
    %c0_144 = arith.constant 0 : index
    %373 = vector.load %arg2[%c128_143, %c0_144] : memref<408x128xf32, #tpu.memory_space<vmem>>, vector<1x128xf32>
    %c129 = arith.constant 129 : index
    %c0_145 = arith.constant 0 : index
    %374 = vector.load %arg2[%c129, %c0_145] : memref<408x128xf32, #tpu.memory_space<vmem>>, vector<1x128xf32>
    %c130 = arith.constant 130 : index
    %c0_146 = arith.constant 0 : index
    %375 = vector.load %arg2[%c130, %c0_146] : memref<408x128xf32, #tpu.memory_space<vmem>>, vector<1x128xf32>
    %c136 = arith.constant 136 : index
    %c0_147 = arith.constant 0 : index
    %376 = vector.load %arg2[%c136, %c0_147] : memref<408x128xf32, #tpu.memory_space<vmem>>, vector<128x128xf32>
    %c264_148 = arith.constant 264 : index
    %c0_149 = arith.constant 0 : index
    %377 = vector.load %arg2[%c264_148, %c0_149] : memref<408x128xf32, #tpu.memory_space<vmem>>, vector<1x128xf32>
    %c265 = arith.constant 265 : index
    %c0_150 = arith.constant 0 : index
    %378 = vector.load %arg2[%c265, %c0_150] : memref<408x128xf32, #tpu.memory_space<vmem>>, vector<1x128xf32>
    %c266 = arith.constant 266 : index
    %c0_151 = arith.constant 0 : index
    %379 = vector.load %arg2[%c266, %c0_151] : memref<408x128xf32, #tpu.memory_space<vmem>>, vector<1x128xf32>
    %c272 = arith.constant 272 : index
    %c0_152 = arith.constant 0 : index
    %380 = vector.load %arg2[%c272, %c0_152] : memref<408x128xf32, #tpu.memory_space<vmem>>, vector<128x128xf32>
    %c400 = arith.constant 400 : index
    %c0_153 = arith.constant 0 : index
    %381 = vector.load %arg2[%c400, %c0_153] : memref<408x128xf32, #tpu.memory_space<vmem>>, vector<1x128xf32>
    %cst_154 = arith.constant dense<0.000000e+00> : vector<8x128xf32>
    %382 = tpu.matmul %371, %372, %cst_154 {dimension_numbers = #tpu.dot_dimension_numbers<[1], [0], [0], [1], [0, 0, 1, 1], [], []>} : vector<8x128xf32>, vector<128x128xf32>, vector<8x128xf32> -> vector<8x128xf32>
    %383 = vector.broadcast %373 : vector<1x128xf32> to vector<8x128xf32>
    %384 = arith.addf %382, %383 : vector<8x128xf32>
    %cst_155 = arith.constant dense<0.000000e+00> : vector<128xf32>
    %385 = vector.multi_reduction <add>, %384, %cst_155 [0] : vector<8x128xf32> to vector<128xf32>
    %386 = vector.shape_cast %385 : vector<128xf32> to vector<1x128xf32>
    %cst_156 = arith.constant 8.000000e+00 : f32
    %387 = vector.broadcast %cst_156 : f32 to vector<1x128xf32>
    %388 = arith.divf %386, %387 : vector<1x128xf32>
    %389 = vector.broadcast %388 : vector<1x128xf32> to vector<8x128xf32>
    %390 = arith.subf %384, %389 : vector<8x128xf32>
    %391 = arith.mulf %390, %390 : vector<8x128xf32>
    %cst_157 = arith.constant dense<0.000000e+00> : vector<128xf32>
    %392 = vector.multi_reduction <add>, %391, %cst_157 [0] : vector<8x128xf32> to vector<128xf32>
    %393 = vector.shape_cast %392 : vector<128xf32> to vector<1x128xf32>
    %cst_158 = arith.constant 8.000000e+00 : f32
    %394 = vector.broadcast %cst_158 : f32 to vector<1x128xf32>
    %395 = arith.divf %393, %394 : vector<1x128xf32>
    %396 = vector.broadcast %388 : vector<1x128xf32> to vector<8x128xf32>
    %397 = arith.subf %384, %396 : vector<8x128xf32>
    %cst_159 = arith.constant 9.99999974E-6 : f32
    %398 = vector.broadcast %cst_159 : f32 to vector<1x128xf32>
    %399 = arith.addf %395, %398 : vector<1x128xf32>
    %400 = math.rsqrt %399 : vector<1x128xf32>
    %401 = vector.broadcast %400 : vector<1x128xf32> to vector<8x128xf32>
    %402 = arith.mulf %397, %401 : vector<8x128xf32>
    %403 = vector.broadcast %374 : vector<1x128xf32> to vector<8x128xf32>
    %404 = arith.mulf %402, %403 : vector<8x128xf32>
    %405 = vector.broadcast %375 : vector<1x128xf32> to vector<8x128xf32>
    %406 = arith.addf %404, %405 : vector<8x128xf32>
    %cst_160 = arith.constant 0.000000e+00 : f32
    %407 = vector.broadcast %cst_160 : f32 to vector<8x128xf32>
    %408 = arith.maximumf %406, %407 : vector<8x128xf32>
    %cst_161 = arith.constant dense<0.000000e+00> : vector<8x128xf32>
    %409 = tpu.matmul %408, %376, %cst_161 {dimension_numbers = #tpu.dot_dimension_numbers<[1], [0], [0], [1], [0, 0, 1, 1], [], []>} : vector<8x128xf32>, vector<128x128xf32>, vector<8x128xf32> -> vector<8x128xf32>
    %410 = vector.broadcast %377 : vector<1x128xf32> to vector<8x128xf32>
    %411 = arith.addf %409, %410 : vector<8x128xf32>
    %cst_162 = arith.constant dense<0.000000e+00> : vector<128xf32>
    %412 = vector.multi_reduction <add>, %411, %cst_162 [0] : vector<8x128xf32> to vector<128xf32>
    %413 = vector.shape_cast %412 : vector<128xf32> to vector<1x128xf32>
    %cst_163 = arith.constant 8.000000e+00 : f32
    %414 = vector.broadcast %cst_163 : f32 to vector<1x128xf32>
    %415 = arith.divf %413, %414 : vector<1x128xf32>
    %416 = vector.broadcast %415 : vector<1x128xf32> to vector<8x128xf32>
    %417 = arith.subf %411, %416 : vector<8x128xf32>
    %418 = arith.mulf %417, %417 : vector<8x128xf32>
    %cst_164 = arith.constant dense<0.000000e+00> : vector<128xf32>
    %419 = vector.multi_reduction <add>, %418, %cst_164 [0] : vector<8x128xf32> to vector<128xf32>
    %420 = vector.shape_cast %419 : vector<128xf32> to vector<1x128xf32>
    %cst_165 = arith.constant 8.000000e+00 : f32
    %421 = vector.broadcast %cst_165 : f32 to vector<1x128xf32>
    %422 = arith.divf %420, %421 : vector<1x128xf32>
    %423 = vector.broadcast %415 : vector<1x128xf32> to vector<8x128xf32>
    %424 = arith.subf %411, %423 : vector<8x128xf32>
    %cst_166 = arith.constant 9.99999974E-6 : f32
    %425 = vector.broadcast %cst_166 : f32 to vector<1x128xf32>
    %426 = arith.addf %422, %425 : vector<1x128xf32>
    %427 = math.rsqrt %426 : vector<1x128xf32>
    %428 = vector.broadcast %427 : vector<1x128xf32> to vector<8x128xf32>
    %429 = arith.mulf %424, %428 : vector<8x128xf32>
    %430 = vector.broadcast %378 : vector<1x128xf32> to vector<8x128xf32>
    %431 = arith.mulf %429, %430 : vector<8x128xf32>
    %432 = vector.broadcast %379 : vector<1x128xf32> to vector<8x128xf32>
    %433 = arith.addf %431, %432 : vector<8x128xf32>
    %cst_167 = arith.constant 0.000000e+00 : f32
    %434 = vector.broadcast %cst_167 : f32 to vector<8x128xf32>
    %435 = arith.maximumf %433, %434 : vector<8x128xf32>
    %cst_168 = arith.constant dense<0.000000e+00> : vector<8x128xf32>
    %436 = tpu.matmul %435, %380, %cst_168 {dimension_numbers = #tpu.dot_dimension_numbers<[1], [0], [0], [1], [0, 0, 1, 1], [], []>} : vector<8x128xf32>, vector<128x128xf32>, vector<8x128xf32> -> vector<8x128xf32>
    %437 = vector.broadcast %381 : vector<1x128xf32> to vector<8x128xf32>
    %438 = arith.addf %436, %437 : vector<8x128xf32>
    %c0_169 = arith.constant 0 : index
    %c0_170 = arith.constant 0 : index
    %439 = vector.load %arg3[%c0_169, %c0_170] : memref<8x128xf32, #tpu.memory_space<vmem>>, vector<8x128xf32>
    tpu.vector_store %arg3[%c0_169, %c0_170], %438 {strides = array<i32>} : memref<8x128xf32, #tpu.memory_space<vmem>>, vector<8x128xf32>,
    return
  }
}

</mosaic_0001>

<bundles_post_ra>
// kernel: rnn_net_forward.1
= control target key start
LH: loop header
LB: loop body
LE: loop exit
PB: predicated region body
PF: predicated region fallthrough
CT: control target
= control target key end

     0   :  { %8 = vsyncpa [#allocation3], 0  ;;  %s5713_s0 = inlined_call_operand.vmem [shape: f32[8,128], index: 0, kind: input, shape index: {}]   ;;  %s5714_s1 = inlined_call_operand.hbm [shape: f32[528,128], index: 1, kind: input, shape index: {}]   ;;  %s5715_s2 = inlined_call_operand.hbm [shape: f32[408,128], index: 2, kind: input, shape index: {}]   ;;  %s5716_s3 = inlined_call_operand.vmem [shape: f32[8,128], index: 3, kind: output, shape index: {}]  }
   0x1   :  { %9 = vsyncpa [#allocation5], 0  ;;  %s4953_s12 = smov [#allocation2]   ;;  %s4905_s16 = scalar_lea.hbm %s5714_s1, 8448 }
   0x2   :  { %s17_s13 = sshll.u32 %s4953_s12, 4  ;;  %p4906_p0 = scmp.ne.s32.totalorder %s5714_s1, %s4905_s16  ;;  %s18_s13 = int_to_ptr.vmem [resolvable:$true] %s17_s13 }
   0x3   :  { %p4909_p1 = scmp.lt.u32.totalorder %s4905_s16, %s5714_s1 }
   0x5   :  { %p4911_p2 = pnand %p4909_p1, %p4906_p0 }
   0x7   :  { %4914 = shalt.err (!%p4911_p2)
}
   0x8   :  { %s4915_s21 = scalar_lea.vmem %s18_s13, 8448  ;;  %p4920_p4 = scmp.lt.s32.totalorder %s18_s13, %s18_s13 }
   0x9   :  { %p4916_p3 = scmp.ne.s32.totalorder %s18_s13, %s4915_s21  ;;  %p4921_p5 = scmp.lt.s32.totalorder %s4915_s21, %s4915_s21 }
   0xb   :  { %p4922_p6 = por %p4921_p5, %p4920_p4 }
   0xd   :  { %p4923_p7 = pnand %p4922_p6, %p4916_p3 }
   0xf   :  { %4926 = shalt.err (!%p4923_p7)
}
  0x10   :  { %s4954_s22 = smov 128   ;;  %s4955_s23 = smov 8  }
  0x11   :  { %23 = dma.hbm_to_vmem [thread:$0]  %s5714_s1, 8448, %s18_s13, [#allocation3], %s4954_s22, %s4954_s22, %s4955_s23  }
  0x12   :  { %s4956_s26 = smov [#allocation4]   ;;  %s4927_s30 = scalar_lea.hbm %s5715_s2, 6528 }
  0x13   :  { %s29_s27 = sshll.u32 %s4956_s26, 4  ;;  %p4928_p8 = scmp.ne.s32.totalorder %s5715_s2, %s4927_s30  ;;  %s30_s27 = int_to_ptr.vmem [resolvable:$true] %s29_s27 }
  0x14   :  { %p4931_p9 = scmp.lt.u32.totalorder %s4927_s30, %s5715_s2 }
  0x16   :  { %p4933_p10 = pnand %p4931_p9, %p4928_p8 }
  0x18   :  { %4936 = shalt.err (!%p4933_p10)
}
  0x19   :  { %s4937_s8 = scalar_lea.vmem %s30_s27, 6528  ;;  %p4942_p12 = scmp.lt.s32.totalorder %s30_s27, %s30_s27 }
  0x1a   :  { %p4938_p11 = scmp.ne.s32.totalorder %s30_s27, %s4937_s8  ;;  %p4943_p13 = scmp.lt.s32.totalorder %s4937_s8, %s4937_s8 }
  0x1c   :  { %p4944_p0 = por %p4943_p13, %p4942_p12 }
  0x1e   :  { %p4945_p1 = pnand %p4944_p0, %p4938_p11 }
  0x20   :  { %4948 = shalt.err (!%p4945_p1)
}
  0x21   :  { %35 = dma.hbm_to_vmem [thread:$0]  %s5715_s2, 6528, %s30_s27, [#allocation5], %s4954_s22, %s4954_s22, %s4955_s23  }
  0x22   :  { %4949 = dma.done.wait [#allocation3], 8448  }
  0x23   :  { %4950 = vsyncadd [#allocation3], 4294958848 }
  0x24   :  { %4951 = dma.done.wait [#allocation5], 6528  }
  0x25   :  { %4952 = vsyncadd [#allocation5], 4294960768  ;;  %v4957_v0 = vmov 0.0|0.0   ;;  %vm4958_vm0 = vmmov 0   ;;  %v4959_v1 = vmov 0.0   ;;  %v54_v2 = vld [vmem:[#allocation2] sm:$0xff] }
  0x26   :  { %4121 = vmatprep.subr.bf16.mxu0 %v4957_v0  ;;  %4145 = vmatprep.subr.bf16.mxu1 %v4957_v0  ;;  %v55_v3 = vld [vmem:[#allocation2 + $0x8] sm:$0xff]  ;;  %v144_v4 = vld [vmem:[#allocation2 + $0x80] sm:$0xff]  ;;  %v56_v7 = vld [vmem:[#allocation2 + $0x10] sm:$0xff]  ;;  %s4961_s11 = smov 32   ;;  %vm2281_vm4 = vcmask 1040384   ;;  %vm2283_vm5 = vcmask 1041408  }
  0x27   :  { %3173 = vmatprep.mubr.msk.f32.mxu0 %vm4958_vm0, %v4959_v1  ;;  %3208 = vmatprep.mubr.msk.f32.mxu1 %vm4958_vm0, %v4959_v1  ;;  %v4122_v5 = vpack.c.bf16 %v55_v3, %v54_v2  ;;  %v145_v6 = vld [vmem:[#allocation2 + $0x88] sm:$0xff]  ;;  %v57_v8 = vld [vmem:[#allocation2 + $0x18] sm:$0xff]  ;;  %v146_v10 = vld [vmem:[#allocation2 + $0x90] sm:$0xff]  ;;  %vm2285_vm6 = vcmask 1042432   ;;  %vm2287_vm7 = vcmask 1043456   ;;  %vm2289_vm8 = vcmask 1044480  }
  0x28   :  { %v5012_v9 = vpack.c.bf16 %v145_v6, %v144_v4  ;;  %v147_v11 = vld [vmem:[#allocation2 + $0x98] sm:$0xff]  ;;  %v4125_v12 = vpack.c.bf16 %v57_v8, %v56_v7  ;;  %v58_v14 = vld [vmem:[#allocation2 + $0x20] sm:$0xff]  ;;  %v59_v15 = vld [vmem:[#allocation2 + $0x28] sm:$0xff]  ;;  %vm2291_vm9 = vcmask 1045504   ;;  %vm2293_vm10 = vcmask 1046528  }
  0x29   :  { %4123 = vmatpush3.bf16.msra.mxu0 %v4122_v5  ;;  %v5016_v13 = vpack.c.bf16 %v147_v11, %v146_v10  ;;  %v148_v16 = vld [vmem:[#allocation2 + $0xa0] sm:$0xff]  ;;  %v149_v17 = vld [vmem:[#allocation2 + $0xa8] sm:$0xff]  ;;  %v4128_v18 = vpack.c.bf16 %v59_v15, %v58_v14  ;;  %v60_v20 = vld [vmem:[#allocation2 + $0x30] sm:$0xff] }
  0x2a   :  { %4147 = vmatpush3.bf16.msra.mxu1 %v5012_v9  ;;  %4124 = vmatprep.subr.bf16.mxu0 %v4957_v0  ;;  %v5021_v19 = vpack.c.bf16 %v149_v17, %v148_v16  ;;  %v61_v21 = vld [vmem:[#allocation2 + $0x38] sm:$0xff]  ;;  %v150_v22 = vld [vmem:[#allocation2 + $0xb0] sm:$0xff]  ;;  %v62_v26 = vld [vmem:[#allocation2 + $0x40] sm:$0xff] }
  0x2b   :  { %4148 = vmatprep.subr.bf16.mxu1 %v4957_v0  ;;  %v151_v23 = vld [vmem:[#allocation2 + $0xb8] sm:$0xff]  ;;  %v4131_v24 = vpack.c.bf16 %v61_v21, %v60_v20  ;;  %v63_v27 = vld [vmem:[#allocation2 + $0x48] sm:$0xff]  ;;  %v152_v28 = vld [vmem:[#allocation2 + $0xc0] sm:$0xff] }
  0x2c   :  { %v5026_v25 = vpack.c.bf16 %v151_v23, %v150_v22  ;;  %v153_v29 = vld [vmem:[#allocation2 + $0xc8] sm:$0xff]  ;;  %v4134_v30 = vpack.c.bf16 %v63_v27, %v62_v26  ;;  %v64_v32 = vld [vmem:[#allocation2 + $0x50] sm:$0xff]  ;;  %v65_v33 = vld [vmem:[#allocation2 + $0x58] sm:$0xff] }
  0x2d   :  { %4126 = vmatpush3.bf16.msra.mxu0 %v4125_v12  ;;  %v5031_v31 = vpack.c.bf16 %v153_v29, %v152_v28  ;;  %v154_v34 = vld [vmem:[#allocation2 + $0xd0] sm:$0xff]  ;;  %v155_v35 = vld [vmem:[#allocation2 + $0xd8] sm:$0xff]  ;;  %v4137_v36 = vpack.c.bf16 %v65_v33, %v64_v32  ;;  %v66_v38 = vld [vmem:[#allocation2 + $0x60] sm:$0xff] }
  0x2e   :  { %4150 = vmatpush3.bf16.msra.mxu1 %v5016_v13  ;;  %4127 = vmatprep.subr.bf16.mxu0 %v4957_v0  ;;  %v5036_v37 = vpack.c.bf16 %v155_v35, %v154_v34  ;;  %v67_v39 = vld [vmem:[#allocation2 + $0x68] sm:$0xff]  ;;  %v156_v40 = vld [vmem:[#allocation2 + $0xe0] sm:$0xff]  ;;  %v68_v44 = vld [vmem:[#allocation2 + $0x70] sm:$0xff]  ;;  %v42_v34 = vlaneseq }
  0x2f   :  { %4151 = vmatprep.subr.bf16.mxu1 %v4957_v0  ;;  %v157_v41 = vld [vmem:[#allocation2 + $0xe8] sm:$0xff]  ;;  %v4140_v42 = vpack.c.bf16 %v67_v39, %v66_v38  ;;  %v69_v45 = vld [vmem:[#allocation2 + $0x78] sm:$0xff]  ;;  %v158_v46 = vld [vmem:[#allocation2 + $0xf0] sm:$0xff] }
  0x30   :  { %v5041_v43 = vpack.c.bf16 %v157_v41, %v156_v40  ;;  %v159_v47 = vld [vmem:[#allocation2 + $0xf8] sm:$0xff]  ;;  %v4143_v48 = vpack.c.bf16 %v69_v45, %v68_v44  ;;  %v53_v50 = vld [vmem:[%s5713_s0] sm:$0xff]  ;;  %s4960_s0 = smov 64   ;;  %v319_v2 = vld [vmem:[#allocation2 + $0x188] sm:$0xff]  ;;  %v43_v35 = vand.u32 127, %v42_v34 }
  0x31   :  { %4129 = vmatpush3.bf16.msra.mxu0 %v4128_v18  ;;  %v5046_v49 = vpack.c.bf16 %v159_v47, %v158_v46  ;;  %v2641_v51 = vld [vmem:[#allocation2 + $0x100] ss:$0 sm:$0xff]  ;;  %v5076_v52 = vld [vmem:[#allocation2 + $0x101] sm:$0x1]  ;;  %v320_v3 = vld [vmem:[#allocation2 + $0x190] sm:$0xff] }
  0x32   :  { %4153 = vmatpush3.bf16.msra.mxu1 %v5021_v19  ;;  %4130 = vmatprep.subr.bf16.mxu0 %v4957_v0  ;;  %v5087_v4 = vpack.c.bf16 %v320_v3, %v319_v2  ;;  %v321_v5 = vld [vmem:[#allocation2 + $0x198] sm:$0xff]  ;;  %v322_v6 = vld [vmem:[#allocation2 + $0x1a0] sm:$0xff]  ;;  %v323_v8 = vld [vmem:[#allocation2 + $0x1a8] sm:$0xff]  ;;  %vm44_vm1 = vcmp.ge.s32.totalorder %v43_v35, 64  ;;  %vm45_vm2 = vcmp.lt.s32.totalorder %v43_v35, 96 }
  0x33   :  { %4154 = vmatprep.subr.bf16.mxu1 %v4957_v0  ;;  %v5091_v7 = vpack.c.bf16 %v322_v6, %v321_v5  ;;  %v324_v10 = vld [vmem:[#allocation2 + $0x1b0] sm:$0xff]  ;;  %v325_v12 = vld [vmem:[#allocation2 + $0x1b8] sm:$0xff]  ;;  %v326_v14 = vld [vmem:[#allocation2 + $0x1c0] sm:$0xff] }
  0x34   :  { %v5095_v11 = vpack.c.bf16 %v324_v10, %v323_v8  ;;  %v5099_v15 = vpack.c.bf16 %v326_v14, %v325_v12  ;;  %v327_v16 = vld [vmem:[#allocation2 + $0x1c8] sm:$0xff]  ;;  %v328_v17 = vld [vmem:[#allocation2 + $0x1d0] sm:$0xff]  ;;  %v329_v20 = vld [vmem:[#allocation2 + $0x1d8] sm:$0xff] }
  0x35   :  { %4132 = vmatpush3.bf16.msra.mxu0 %v4131_v24  ;;  %v5103_v18 = vpack.c.bf16 %v328_v17, %v327_v16  ;;  %v330_v21 = vld [vmem:[#allocation2 + $0x1e0] sm:$0xff]  ;;  %v331_v23 = vld [vmem:[#allocation2 + $0x1e8] sm:$0xff]  ;;  %v332_v24 = vld [vmem:[#allocation2 + $0x1f0] sm:$0xff] }
  0x36   :  { %4156 = vmatpush3.bf16.msra.mxu1 %v5026_v25  ;;  %4133 = vmatprep.subr.bf16.mxu0 %v4957_v0  ;;  %v5107_v22 = vpack.c.bf16 %v330_v21, %v329_v20  ;;  %v5111_v26 = vpack.c.bf16 %v332_v24, %v331_v23  ;;  %v333_v27 = vld [vmem:[#allocation2 + $0x1f8] sm:$0xff]  ;;  %v334_v28 = vld [vmem:[#allocation2 + $0x200] sm:$0xff]  ;;  %vm46_vm3 = vmand %vm44_vm1, %vm45_vm2 }
  0x37   :  { %4157 = vmatprep.subr.bf16.mxu1 %v4957_v0  ;;  %v5115_v29 = vpack.c.bf16 %v334_v28, %v333_v27  ;;  %v406_v44 = vld [vmem:[#allocation2 + $0x110] sm:$0xff]  ;;  %v5141_v45 = vsel %vm46_vm3, 1.0, %v4959_v1  ;;  %v415_v2 = vld [vmem:[#allocation2 + $0x158] sm:$0xff]  ;;  %v416_v3 = vld [vmem:[#allocation2 + $0x160] sm:$0xff] }
  0x38   :  { %v5168_v5 = vpack.c.bf16 %v416_v3, %v415_v2  ;;  %v417_v6 = vld [vmem:[#allocation2 + $0x168] sm:$0xff]  ;;  %v418_v8 = vld [vmem:[#allocation2 + $0x170] sm:$0xff]  ;;  %v419_v12 = vld [vmem:[#allocation2 + $0x178] sm:$0xff] }
  0x39   :  { %4135 = vmatpush3.bf16.msra.mxu0 %v4134_v30  ;;  %v5172_v10 = vpack.c.bf16 %v418_v8, %v417_v6  ;;  %v420_v14 = vld [vmem:[#allocation2 + $0x180] sm:$0xff]  ;;  %v5202_v34 = vld [vmem:[#allocation2 + $0x209] sm:$0x1]  ;;  %v5204_v35 = vld [vmem:[#allocation2 + $0x208] sm:$0x1] }
  0x3a   :  { %4159 = vmatpush3.bf16.msra.mxu1 %v5031_v31  ;;  %4136 = vmatprep.subr.bf16.mxu0 %v4957_v0  ;;  %v5176_v16 = vpack.c.bf16 %v420_v14, %v419_v12 }
  0x3b   :  { %4160 = vmatprep.subr.bf16.mxu1 %v4957_v0 }
  0x3d   :  { %4138 = vmatpush3.bf16.msra.mxu0 %v4137_v36 }
  0x3e   :  { %4162 = vmatpush3.bf16.msra.mxu1 %v5036_v37  ;;  %4139 = vmatprep.subr.bf16.mxu0 %v4957_v0 }
  0x3f   :  { %4163 = vmatprep.subr.bf16.mxu1 %v4957_v0 }
  0x41   :  { %4141 = vmatpush3.bf16.msra.mxu0 %v4140_v42  ;;  %v405_v42 = vld [vmem:[#allocation2 + $0x108] sm:$0xff] }
  0x42   :  { %4165 = vmatpush3.bf16.msra.mxu1 %v5041_v43  ;;  %4142 = vmatprep.subr.bf16.mxu0 %v4957_v0  ;;  %v5143_v47 = vpack.c.bf16 %v406_v44, %v405_v42 }
  0x43   :  { %4166 = vmatprep.subr.bf16.mxu1 %v4957_v0 }
  0x45   :  { %4144 = vmatpush3.bf16.msra.mxu0 %v4143_v48 }
  0x46   :  { %4168 = vmatpush3.bf16.msra.mxu1 %v5046_v49  ;;  %4169 = vmatprep.subr.bf16.mxu0 %v4957_v0 }
  0x47   :  { %4193 = vmatprep.subr.bf16.mxu1 %v4957_v0 }
  0x48   :  { %3174 = vmatmul.mubr.f32.vlgmr.msra.gmra.mrb[0].mxu0 %v53_v50  ;;  %v407_v50 = vld [vmem:[#allocation2 + $0x118] sm:$0xff] }
  0x49   :  { %3209 = vmatmul.mubr.f32.vlgmr.msra.gmra.mrb[0].mxu1 %v4959_v1  ;;  %4171 = vmatpush3.bf16.msra.mxu0 %v5012_v9 }
  0x4a   :  { %4172 = vmatprep.subr.bf16.mxu0 %v4957_v0  ;;  %3243 = vmatprep.mubr.msk.f32.mxu0 %vm4958_vm0, %v4959_v1 }
  0x4b   :  { %3278 = vmatprep.mubr.msk.f32.mxu1 %vm4958_vm0, %v4959_v1  ;;  %4195 = vmatpush3.bf16.msra.mxu1 %v5087_v4 }
  0x4c   :  { %4196 = vmatprep.subr.bf16.mxu1 %v4957_v0 }
  0x4d   :  { %4174 = vmatpush3.bf16.msra.mxu0 %v5016_v13 }
  0x4e   :  { %4175 = vmatprep.subr.bf16.mxu0 %v4957_v0 }
  0x4f   :  { %4198 = vmatpush3.bf16.msra.mxu1 %v5091_v7 }
  0x50   :  { %4199 = vmatprep.subr.bf16.mxu1 %v4957_v0 }
  0x51   :  { %4177 = vmatpush3.bf16.msra.mxu0 %v5021_v19 }
  0x52   :  { %4178 = vmatprep.subr.bf16.mxu0 %v4957_v0 }
  0x53   :  { %4201 = vmatpush3.bf16.msra.mxu1 %v5095_v11 }
  0x54   :  { %4202 = vmatprep.subr.bf16.mxu1 %v4957_v0 }
  0x55   :  { %4180 = vmatpush3.bf16.msra.mxu0 %v5026_v25 }
  0x56   :  { %4181 = vmatprep.subr.bf16.mxu0 %v4957_v0 }
  0x57   :  { %4204 = vmatpush3.bf16.msra.mxu1 %v5099_v15 }
  0x58   :  { %4205 = vmatprep.subr.bf16.mxu1 %v4957_v0 }
  0x59   :  { %4183 = vmatpush3.bf16.msra.mxu0 %v5031_v31 }
  0x5a   :  { %4184 = vmatprep.subr.bf16.mxu0 %v4957_v0 }
  0x5b   :  { %4207 = vmatpush3.bf16.msra.mxu1 %v5103_v18 }
  0x5c   :  { %4208 = vmatprep.subr.bf16.mxu1 %v4957_v0 }
  0x5d   :  { %4186 = vmatpush3.bf16.msra.mxu0 %v5036_v37 }
  0x5e   :  { %4187 = vmatprep.subr.bf16.mxu0 %v4957_v0 }
  0x5f   :  { %4210 = vmatpush3.bf16.msra.mxu1 %v5107_v22 }
  0x60   :  { %4211 = vmatprep.subr.bf16.mxu1 %v4957_v0 }
  0x61   :  { %4189 = vmatpush3.bf16.msra.mxu0 %v5041_v43 }
  0x62   :  { %4190 = vmatprep.subr.bf16.mxu0 %v4957_v0 }
  0x63   :  { %4213 = vmatpush3.bf16.msra.mxu1 %v5111_v26 }
  0x64   :  { %4214 = vmatprep.subr.bf16.mxu1 %v4957_v0 }
  0x65   :  { %4192 = vmatpush3.bf16.msra.mxu0 %v5046_v49 }
  0x66   :  { %4217 = vmatprep.subr.bf16.mxu0 %v4957_v0 }
  0x67   :  { %4216 = vmatpush3.bf16.msra.mxu1 %v5115_v29 }
  0x68   :  { %4241 = vmatprep.subr.bf16.mxu1 %v4957_v0 }
  0x6a   :  { %3279 = vmatmul.mubr.f32.vlgmr.msra.gmra.mrb[2].mxu1 %v4959_v1 }
  0x6b   :  { %4243 = vmatpush3.bf16.msra.mxu1 %v5012_v9  ;;  %3348 = vmatprep.mubr.msk.f32.mxu1 %vm4958_vm0, %v4959_v1 }
  0x6c   :  { %4244 = vmatprep.subr.bf16.mxu1 %v4957_v0 }
  0x6f   :  { %4246 = vmatpush3.bf16.msra.mxu1 %v5016_v13 }
  0x70   :  { %4247 = vmatprep.subr.bf16.mxu1 %v4957_v0 }
  0x73   :  { %4249 = vmatpush3.bf16.msra.mxu1 %v5021_v19 }
  0x74   :  { %4250 = vmatprep.subr.bf16.mxu1 %v4957_v0 }
  0x77   :  { %4252 = vmatpush3.bf16.msra.mxu1 %v5026_v25 }
  0x78   :  { %4253 = vmatprep.subr.bf16.mxu1 %v4957_v0 }
  0x7b   :  { %4255 = vmatpush3.bf16.msra.mxu1 %v5031_v31 }
  0x7c   :  { %4256 = vmatprep.subr.bf16.mxu1 %v4957_v0 }
  0x7f   :  { %4258 = vmatpush3.bf16.msra.mxu1 %v5036_v37 }
  0x80   :  { %4259 = vmatprep.subr.bf16.mxu1 %v4957_v0 }
  0x83   :  { %4261 = vmatpush3.bf16.msra.mxu1 %v5041_v43 }
  0x84   :  { %4262 = vmatprep.subr.bf16.mxu1 %v4957_v0 }
  0x87   :  { %4264 = vmatpush3.bf16.msra.mxu1 %v5046_v49 }
  0x88   :  { %4289 = vmatprep.subr.bf16.mxu1 %v4957_v0 }
 0x11b   :  { %v140_v53 = vpop.f32.mrb[0].mxu0 }
 0x11c   :  { %v5078_v54 = vadd.f32 %v2641_v51, %v140_v53  ;;  %v226_v55 = vpop.f32.mrb[0].mxu1  ;;  %v3175_v56 = vpop.f32.mrb[1].mxu0  ;;  %v408_v51 = vld [vmem:[#allocation2 + $0x120] sm:$0xff] }
 0x11d   :  { %v5081_v57 = vadd.f32 %v226_v55, %v5076_v52  ;;  %v3210_v58 = vpop.f32.mrb[1].mxu1  ;;  %v5150_v53 = vpack.c.bf16 %v408_v51, %v407_v50  ;;  %v409_v55 = vld [vmem:[#allocation2 + $0x128] sm:$0xff]  ;;  %v410_v56 = vld [vmem:[#allocation2 + $0x130] sm:$0xff] }
 0x11e   :  { %v411_v58 = vld [vmem:[#allocation2 + $0x138] sm:$0xff] }
 0x11f   :  { %v230_v59 = vadd.f32 %v5081_v57, %v5078_v54 }
 0x121   :  { %v2642_v60 = vmul.f32 -1.442695, %v230_v59  ;;  %v412_v59 = vld [vmem:[#allocation2 + $0x140] sm:$0xff] }
 0x123   :  { %4802 = vpow2.f32 %v2642_v60  ;;  %v5160_v60 = vpack.c.bf16 %v412_v59, %v411_v58 }
 0x12d   :  { %v4803_v61 = vpop.eup %4802 }
 0x12e   :  { %v234_v62 = vadd.f32 1.0, %v4803_v61  ;;  %v413_v61 = vld [vmem:[#allocation2 + $0x148] sm:$0xff] }
 0x130   :  { %4804 = vrcp.f32 %v234_v62  ;;  %v414_v62 = vld [vmem:[#allocation2 + $0x150] sm:$0xff] }
 0x13a   :  { %v4805_v63 = vpop.eup %4804 }
 0x13b   :  { %237 = vrot.lane.b32.xlu0 %v4805_v63, %s4960_s0 }
 0x13d   :  { %v401_v17 = vpop.f32.mrb[2].mxu1 }
 0x13e   :  { %v3280_v20 = vpop.f32.mrb[3].mxu1 }
 0x13f   :  { %239 = vrot.lane.b32.xlu0 %v4805_v63, %s4961_s11  ;;  %v5164_v63 = vpack.c.bf16 %v414_v62, %v413_v61 }
 0x1ad   :  { %v238_v30 = vpop.permute.xlu0 %237 }
 0x1ae   :  { %v241_v32 = vmul.f32 %v238_v30, %v5081_v57  ;;  %v5156_v57 = vpack.c.bf16 %v410_v56, %v409_v55 }
 0x1b0   :  { %v242_v33 = vadd.f32 %v241_v32, %v5078_v54 }
 0x1b1   :  { %v240_v36 = vpop.permute.xlu0 %239 }
 0x1b2   :  { %4806 = vtanh.f32 %v242_v33  ;;  %v244_v38 = vsub.f32 1.0, %v240_v36  ;;  %v246_v41 = vmul.f32 0.0, %v240_v36  ;;  %v402_v36 = vadd.f32 %v401_v17, %v5202_v34 }
 0x1bc   :  { %v4807_v39 = vpop.eup %4806 }
 0x1bd   :  { %v245_v40 = vmul.f32 %v4807_v39, %v244_v38 }
 0x1bf   :  { %v247_v46 = vadd.f32 %v246_v41, %v245_v40 }
 0x1c1   :  { %v5146_v48 = vmul.f32 %v5141_v45, %v247_v46 }
 0x1c3   :  { %3244 = vmatmul.mubr.f32.vlgmr.msra.gmra.mrb[2].mxu0 %v5146_v48 }
 0x1c4   :  { %4219 = vmatpush3.bf16.msra.mxu0 %v5143_v47  ;;  %3313 = vmatprep.mubr.msk.f32.mxu0 %vm4958_vm0, %v4959_v1 }
 0x1c5   :  { %4220 = vmatprep.subr.bf16.mxu0 %v4957_v0 }
 0x1c8   :  { %4222 = vmatpush3.bf16.msra.mxu0 %v5150_v53 }
 0x1c9   :  { %4223 = vmatprep.subr.bf16.mxu0 %v4957_v0 }
 0x1cc   :  { %4225 = vmatpush3.bf16.msra.mxu0 %v5156_v57 }
 0x1cd   :  { %4226 = vmatprep.subr.bf16.mxu0 %v4957_v0 }
 0x1d0   :  { %4228 = vmatpush3.bf16.msra.mxu0 %v5160_v60 }
 0x1d1   :  { %4229 = vmatprep.subr.bf16.mxu0 %v4957_v0 }
 0x1d4   :  { %4231 = vmatpush3.bf16.msra.mxu0 %v5164_v63 }
 0x1d5   :  { %4232 = vmatprep.subr.bf16.mxu0 %v4957_v0 }
 0x1d8   :  { %4234 = vmatpush3.bf16.msra.mxu0 %v5168_v5 }
 0x1d9   :  { %4235 = vmatprep.subr.bf16.mxu0 %v4957_v0 }
 0x1dc   :  { %4237 = vmatpush3.bf16.msra.mxu0 %v5172_v10 }
 0x1dd   :  { %4238 = vmatprep.subr.bf16.mxu0 %v4957_v0 }
 0x1e0   :  { %4240 = vmatpush3.bf16.msra.mxu0 %v5176_v16 }
 0x1e1   :  { %4265 = vmatprep.subr.bf16.mxu0 %v4957_v0 }
 0x1e3   :  { %3314 = vmatmul.mubr.f32.vlgmr.msra.gmra.mrb[4].mxu0 %v5146_v48 }
 0x1e4   :  { %4267 = vmatpush3.bf16.msra.mxu0 %v5087_v4  ;;  %3383 = vmatprep.mubr.msk.f32.mxu0 %vm4958_vm0, %v4959_v1 }
 0x1e5   :  { %4268 = vmatprep.subr.bf16.mxu0 %v4957_v0 }
 0x1e8   :  { %4270 = vmatpush3.bf16.msra.mxu0 %v5091_v7 }
 0x1e9   :  { %4271 = vmatprep.subr.bf16.mxu0 %v4957_v0 }
 0x1ec   :  { %4273 = vmatpush3.bf16.msra.mxu0 %v5095_v11 }
 0x1ed   :  { %4274 = vmatprep.subr.bf16.mxu0 %v4957_v0 }
 0x1f0   :  { %4276 = vmatpush3.bf16.msra.mxu0 %v5099_v15 }
 0x1f1   :  { %4277 = vmatprep.subr.bf16.mxu0 %v4957_v0 }
 0x1f4   :  { %4279 = vmatpush3.bf16.msra.mxu0 %v5103_v18 }
 0x1f5   :  { %4280 = vmatprep.subr.bf16.mxu0 %v4957_v0 }
 0x1f8   :  { %4282 = vmatpush3.bf16.msra.mxu0 %v5107_v22 }
 0x1f9   :  { %4283 = vmatprep.subr.bf16.mxu0 %v4957_v0 }
 0x1fc   :  { %4285 = vmatpush3.bf16.msra.mxu0 %v5111_v26 }
 0x1fd   :  { %4286 = vmatprep.subr.bf16.mxu0 %v4957_v0 }
 0x200   :  { %4288 = vmatpush3.bf16.msra.mxu0 %v5115_v29 }
 0x201   :  { %4313 = vmatprep.subr.bf16.mxu0 %v4957_v0 }
 0x296   :  { %v315_v21 = vpop.f32.mrb[2].mxu0 }
 0x297   :  { %v316_v23 = vadd.f32 %v315_v21, %v5076_v52  ;;  %v3245_v24 = vpop.f32.mrb[3].mxu0 }
 0x299   :  { %v492_v27 = vrot.slane %v316_v23, 7 }
 0x29b   :  { %v494_v28 = vadd.f32 %v492_v27, %v5078_v54 }
 0x29d   :  { %v2643_v30 = vmul.f32 -1.442695, %v494_v28 }
 0x29f   :  { %4808 = vpow2.f32 %v2643_v30 }
 0x2a9   :  { %v4809_v32 = vpop.eup %4808 }
 0x2aa   :  { %v498_v33 = vadd.f32 1.0, %v4809_v32 }
 0x2ac   :  { %4810 = vrcp.f32 %v498_v33 }
 0x2b6   :  { %v4811_v38 = vpop.eup %4810  ;;  %v487_v39 = vpop.f32.mrb[4].mxu0 }
 0x2b7   :  { %v488_v40 = vadd.f32 %v487_v39, %v5204_v35  ;;  %v3315_v41 = vpop.f32.mrb[5].mxu0  ;;  %v502_v42 = vrot.slane %v4811_v38, 1 }
 0x2b9   :  { %v522_v44 = vadd.f32 %v488_v40, %v402_v36  ;;  %504 = vrot.lane.b32.xlu1 %v502_v42, %s4960_s0 }
 0x2bb   :  { %v2644_v46 = vmul.f32 -1.442695, %v522_v44 }
 0x2bd   :  { %4812 = vpow2.f32 %v2644_v46  ;;  %506 = vrot.lane.b32.xlu1 %v502_v42, %s4961_s11 }
 0x2c7   :  { %v4813_v50 = vpop.eup %4812 }
 0x2c8   :  { %v526_v51 = vadd.f32 1.0, %v4813_v50 }
 0x2ca   :  { %4814 = vrcp.f32 %v526_v51 }
 0x2d4   :  { %v4815_v55 = vpop.eup %4814 }
 0x2d5   :  { %531 = vrot.lane.b32.xlu1 %v4815_v55, %s4961_s11  ;;  %529 = vrot.lane.b32.xlu0 %v4815_v55, %s4960_s0 }
 0x32b   :  { %v505_v56 = vpop.permute.xlu1 %504 }
 0x32c   :  { %v508_v58 = vmul.f32 %v505_v56, %v316_v23 }
 0x32e   :  { %v510_v59 = vrot.slane %v508_v58, 7 }
 0x32f   :  { %v507_v62 = vpop.permute.xlu1 %506 }
 0x330   :  { %v512_v61 = vadd.f32 %v510_v59, %v5078_v54  ;;  %v514_v6 = vsub.f32 1.0, %v507_v62  ;;  %v519_v12 = vmul.f32 %v507_v62, %v5146_v48 }
 0x332   :  { %4816 = vtanh.f32 %v512_v61 }
 0x33c   :  { %v4817_v2 = vpop.eup %4816 }
 0x33d   :  { %v516_v3 = vrot.slane %v4817_v2, 1 }
 0x33f   :  { %v518_v8 = vmul.f32 %v516_v3, %v514_v6 }
 0x341   :  { %v520_v14 = vadd.f32 %v519_v12, %v518_v8 }
 0x343   :  { %v5215_v17 = vmul.f32 %v5141_v45, %v520_v14 }
 0x345   :  { %3349 = vmatmul.mubr.f32.vlgmr.msra.gmra.mrb[4].mxu1 %v5215_v17 }
 0x346   :  { %4291 = vmatpush3.bf16.msra.mxu1 %v5143_v47  ;;  %3418 = vmatprep.mubr.msk.f32.mxu1 %vm4958_vm0, %v4959_v1 }
 0x347   :  { %v530_v20 = vpop.permute.xlu0 %529  ;;  %4292 = vmatprep.subr.bf16.mxu1 %v4957_v0  ;;  %v532_v48 = vpop.permute.xlu1 %531 }
 0x348   :  { %v533_v21 = vmul.f32 %v530_v20, %v402_v36  ;;  %v536_v24 = vsub.f32 1.0, %v532_v48  ;;  %v538_v28 = vmul.f32 0.0, %v532_v48 }
 0x34a   :  { %v534_v23 = vadd.f32 %v533_v21, %v488_v40  ;;  %4294 = vmatpush3.bf16.msra.mxu1 %v5150_v53 }
 0x34b   :  { %4295 = vmatprep.subr.bf16.mxu1 %v4957_v0 }
 0x34c   :  { %4818 = vtanh.f32 %v534_v23 }
 0x34e   :  { %4297 = vmatpush3.bf16.msra.mxu1 %v5156_v57 }
 0x34f   :  { %4298 = vmatprep.subr.bf16.mxu1 %v4957_v0 }
 0x352   :  { %4300 = vmatpush3.bf16.msra.mxu1 %v5160_v60 }
 0x353   :  { %4301 = vmatprep.subr.bf16.mxu1 %v4957_v0 }
 0x356   :  { %v4819_v27 = vpop.eup %4818  ;;  %4303 = vmatpush3.bf16.msra.mxu1 %v5164_v63 }
 0x357   :  { %4304 = vmatprep.subr.bf16.mxu1 %v4957_v0  ;;  %v537_v30 = vmul.f32 %v4819_v27, %v536_v24 }
 0x359   :  { %v539_v32 = vadd.f32 %v538_v28, %v537_v30 }
 0x35a   :  { %4306 = vmatpush3.bf16.msra.mxu1 %v5168_v5 }
 0x35b   :  { %v5232_v33 = vmul.f32 %v5141_v45, %v539_v32  ;;  %4307 = vmatprep.subr.bf16.mxu1 %v4957_v0 }
 0x35d   :  { %3384 = vmatmul.mubr.f32.vlgmr.msra.gmra.mrb[6].mxu0 %v5232_v33 }
 0x35e   :  { %4309 = vmatpush3.bf16.msra.mxu1 %v5172_v10  ;;  %4315 = vmatpush3.bf16.msra.mxu0 %v5012_v9 }
 0x35f   :  { %4310 = vmatprep.subr.bf16.mxu1 %v4957_v0  ;;  %4316 = vmatprep.subr.bf16.mxu0 %v4957_v0 }
 0x360   :  { %3453 = vmatprep.mubr.msk.f32.mxu0 %vm4958_vm0, %v4959_v1 }
 0x362   :  { %4312 = vmatpush3.bf16.msra.mxu1 %v5176_v16  ;;  %4318 = vmatpush3.bf16.msra.mxu0 %v5016_v13 }
 0x363   :  { %4319 = vmatprep.subr.bf16.mxu0 %v4957_v0  ;;  %4337 = vmatprep.subr.bf16.mxu1 %v4957_v0 }
 0x365   :  { %3419 = vmatmul.mubr.f32.vlgmr.msra.gmra.mrb[6].mxu1 %v5215_v17 }
 0x366   :  { %4321 = vmatpush3.bf16.msra.mxu0 %v5021_v19  ;;  %4339 = vmatpush3.bf16.msra.mxu1 %v5087_v4 }
 0x367   :  { %4322 = vmatprep.subr.bf16.mxu0 %v4957_v0  ;;  %4340 = vmatprep.subr.bf16.mxu1 %v4957_v0 }
 0x368   :  { %3488 = vmatprep.mubr.msk.f32.mxu1 %vm4958_vm0, %v4959_v1 }
 0x36a   :  { %4324 = vmatpush3.bf16.msra.mxu0 %v5026_v25  ;;  %4342 = vmatpush3.bf16.msra.mxu1 %v5091_v7 }
 0x36b   :  { %4325 = vmatprep.subr.bf16.mxu0 %v4957_v0  ;;  %4343 = vmatprep.subr.bf16.mxu1 %v4957_v0 }
 0x36e   :  { %4327 = vmatpush3.bf16.msra.mxu0 %v5031_v31  ;;  %4345 = vmatpush3.bf16.msra.mxu1 %v5095_v11 }
 0x36f   :  { %4328 = vmatprep.subr.bf16.mxu0 %v4957_v0  ;;  %4346 = vmatprep.subr.bf16.mxu1 %v4957_v0 }
 0x372   :  { %4330 = vmatpush3.bf16.msra.mxu0 %v5036_v37  ;;  %4348 = vmatpush3.bf16.msra.mxu1 %v5099_v15 }
 0x373   :  { %4331 = vmatprep.subr.bf16.mxu0 %v4957_v0  ;;  %4349 = vmatprep.subr.bf16.mxu1 %v4957_v0 }
 0x376   :  { %4333 = vmatpush3.bf16.msra.mxu0 %v5041_v43  ;;  %4351 = vmatpush3.bf16.msra.mxu1 %v5103_v18 }
 0x377   :  { %4334 = vmatprep.subr.bf16.mxu0 %v4957_v0  ;;  %4352 = vmatprep.subr.bf16.mxu1 %v4957_v0 }
 0x37a   :  { %4336 = vmatpush3.bf16.msra.mxu0 %v5046_v49  ;;  %4354 = vmatpush3.bf16.msra.mxu1 %v5107_v22 }
 0x37b   :  { %4361 = vmatprep.subr.bf16.mxu0 %v4957_v0  ;;  %4355 = vmatprep.subr.bf16.mxu1 %v4957_v0 }
 0x37e   :  { %4357 = vmatpush3.bf16.msra.mxu1 %v5111_v26 }
 0x37f   :  { %4358 = vmatprep.subr.bf16.mxu1 %v4957_v0 }
 0x382   :  { %4360 = vmatpush3.bf16.msra.mxu1 %v5115_v29 }
 0x383   :  { %4385 = vmatprep.subr.bf16.mxu1 %v4957_v0 }
 0x418   :  { %v607_v36 = vpop.f32.mrb[4].mxu1 }
 0x419   :  { %v608_v38 = vadd.f32 %v607_v36, %v5076_v52  ;;  %v3350_v39 = vpop.f32.mrb[5].mxu1 }
 0x41b   :  { %v752_v40 = vrot.slane %v608_v38, 6 }
 0x41d   :  { %v754_v41 = vadd.f32 %v752_v40, %v5078_v54 }
 0x41f   :  { %v2645_v42 = vmul.f32 -1.442695, %v754_v41 }
 0x421   :  { %4820 = vpow2.f32 %v2645_v42 }
 0x42b   :  { %v4821_v44 = vpop.eup %4820 }
 0x42c   :  { %v758_v46 = vadd.f32 1.0, %v4821_v44 }
 0x42e   :  { %4822 = vrcp.f32 %v758_v46 }
 0x430   :  { %v677_v50 = vpop.f32.mrb[6].mxu0 }
 0x431   :  { %v3385_v51 = vpop.f32.mrb[7].mxu0  ;;  %v678_v58 = vadd.f32 %v677_v50, %v5202_v34 }
 0x438   :  { %v4823_v55 = vpop.eup %4822  ;;  %v747_v56 = vpop.f32.mrb[6].mxu1 }
 0x439   :  { %v748_v59 = vadd.f32 %v747_v56, %v5204_v35  ;;  %v3420_v61 = vpop.f32.mrb[7].mxu1  ;;  %v762_v62 = vrot.slane %v4823_v55, 2 }
 0x43b   :  { %v782_v2 = vadd.f32 %v748_v59, %v678_v58  ;;  %766 = vrot.lane.b32.xlu1 %v762_v62, %s4961_s11  ;;  %764 = vrot.lane.b32.xlu0 %v762_v62, %s4960_s0 }
 0x43d   :  { %v2646_v3 = vmul.f32 -1.442695, %v782_v2 }
 0x43f   :  { %4824 = vpow2.f32 %v2646_v3 }
 0x449   :  { %v4825_v6 = vpop.eup %4824 }
 0x44a   :  { %v786_v8 = vadd.f32 1.0, %v4825_v6 }
 0x44c   :  { %4826 = vrcp.f32 %v786_v8 }
 0x456   :  { %v4827_v12 = vpop.eup %4826 }
 0x457   :  { %791 = vrot.lane.b32.xlu1 %v4827_v12, %s4961_s11  ;;  %789 = vrot.lane.b32.xlu0 %v4827_v12, %s4960_s0 }
 0x4ad   :  { %v765_v14 = vpop.permute.xlu0 %764  ;;  %v767_v48 = vpop.permute.xlu1 %766 }
 0x4ae   :  { %v768_v20 = vmul.f32 %v765_v14, %v608_v38  ;;  %v774_v27 = vsub.f32 1.0, %v767_v48  ;;  %v779_v30 = vmul.f32 %v767_v48, %v5215_v17 }
 0x4b0   :  { %v770_v21 = vrot.slane %v768_v20, 6 }
 0x4b2   :  { %v772_v23 = vadd.f32 %v770_v21, %v5078_v54 }
 0x4b4   :  { %4828 = vtanh.f32 %v772_v23 }
 0x4be   :  { %v4829_v24 = vpop.eup %4828 }
 0x4bf   :  { %v776_v28 = vrot.slane %v4829_v24, 2 }
 0x4c1   :  { %v778_v32 = vmul.f32 %v776_v28, %v774_v27 }
 0x4c3   :  { %v780_v36 = vadd.f32 %v779_v30, %v778_v32 }
 0x4c5   :  { %v5288_v39 = vmul.f32 %v5141_v45, %v780_v36 }
 0x4c7   :  { %3454 = vmatmul.mubr.f32.vlgmr.msra.gmra.mrb[8].mxu0 %v5288_v39 }
 0x4c8   :  { %4363 = vmatpush3.bf16.msra.mxu0 %v5143_v47  ;;  %3523 = vmatprep.mubr.msk.f32.mxu0 %vm4958_vm0, %v4959_v1 }
 0x4c9   :  { %v790_v38 = vpop.permute.xlu0 %789  ;;  %4364 = vmatprep.subr.bf16.mxu0 %v4957_v0  ;;  %v792_v17 = vpop.permute.xlu1 %791 }
 0x4ca   :  { %v793_v40 = vmul.f32 %v790_v38, %v678_v58  ;;  %v796_v42 = vsub.f32 1.0, %v792_v17  ;;  %v798_v46 = vmul.f32 %v792_v17, %v5232_v33 }
 0x4cc   :  { %v794_v41 = vadd.f32 %v793_v40, %v748_v59  ;;  %4366 = vmatpush3.bf16.msra.mxu0 %v5150_v53 }
 0x4cd   :  { %4367 = vmatprep.subr.bf16.mxu0 %v4957_v0 }
 0x4ce   :  { %4830 = vtanh.f32 %v794_v41 }
 0x4d0   :  { %4369 = vmatpush3.bf16.msra.mxu0 %v5156_v57 }
 0x4d1   :  { %4370 = vmatprep.subr.bf16.mxu0 %v4957_v0 }
 0x4d4   :  { %4372 = vmatpush3.bf16.msra.mxu0 %v5160_v60 }
 0x4d5   :  { %4373 = vmatprep.subr.bf16.mxu0 %v4957_v0 }
 0x4d8   :  { %v4831_v44 = vpop.eup %4830  ;;  %4375 = vmatpush3.bf16.msra.mxu0 %v5164_v63 }
 0x4d9   :  { %4376 = vmatprep.subr.bf16.mxu0 %v4957_v0  ;;  %v797_v50 = vmul.f32 %v4831_v44, %v796_v42 }
 0x4db   :  { %v799_v51 = vadd.f32 %v798_v46, %v797_v50 }
 0x4dc   :  { %4378 = vmatpush3.bf16.msra.mxu0 %v5168_v5 }
 0x4dd   :  { %v5306_v55 = vmul.f32 %v5141_v45, %v799_v51  ;;  %4379 = vmatprep.subr.bf16.mxu0 %v4957_v0 }
 0x4df   :  { %3489 = vmatmul.mubr.f32.vlgmr.msra.gmra.mrb[8].mxu1 %v5306_v55 }
 0x4e0   :  { %4381 = vmatpush3.bf16.msra.mxu0 %v5172_v10  ;;  %4387 = vmatpush3.bf16.msra.mxu1 %v5012_v9 }
 0x4e1   :  { %4382 = vmatprep.subr.bf16.mxu0 %v4957_v0  ;;  %4388 = vmatprep.subr.bf16.mxu1 %v4957_v0 }
 0x4e2   :  { %3558 = vmatprep.mubr.msk.f32.mxu1 %vm4958_vm0, %v4959_v1 }
 0x4e4   :  { %4384 = vmatpush3.bf16.msra.mxu0 %v5176_v16  ;;  %4390 = vmatpush3.bf16.msra.mxu1 %v5016_v13 }
 0x4e5   :  { %4391 = vmatprep.subr.bf16.mxu1 %v4957_v0  ;;  %4409 = vmatprep.subr.bf16.mxu0 %v4957_v0 }
 0x4e7   :  { %3524 = vmatmul.mubr.f32.vlgmr.msra.gmra.mrb[10].mxu0 %v5288_v39 }
 0x4e8   :  { %4393 = vmatpush3.bf16.msra.mxu1 %v5021_v19  ;;  %4411 = vmatpush3.bf16.msra.mxu0 %v5087_v4 }
 0x4e9   :  { %4394 = vmatprep.subr.bf16.mxu1 %v4957_v0  ;;  %4412 = vmatprep.subr.bf16.mxu0 %v4957_v0 }
 0x4ea   :  { %3593 = vmatprep.mubr.msk.f32.mxu0 %vm4958_vm0, %v4959_v1 }
 0x4ec   :  { %4396 = vmatpush3.bf16.msra.mxu1 %v5026_v25  ;;  %4414 = vmatpush3.bf16.msra.mxu0 %v5091_v7 }
 0x4ed   :  { %4397 = vmatprep.subr.bf16.mxu1 %v4957_v0  ;;  %4415 = vmatprep.subr.bf16.mxu0 %v4957_v0 }
 0x4f0   :  { %4399 = vmatpush3.bf16.msra.mxu1 %v5031_v31  ;;  %4417 = vmatpush3.bf16.msra.mxu0 %v5095_v11 }
 0x4f1   :  { %4400 = vmatprep.subr.bf16.mxu1 %v4957_v0  ;;  %4418 = vmatprep.subr.bf16.mxu0 %v4957_v0 }
 0x4f4   :  { %4402 = vmatpush3.bf16.msra.mxu1 %v5036_v37  ;;  %4420 = vmatpush3.bf16.msra.mxu0 %v5099_v15 }
 0x4f5   :  { %4403 = vmatprep.subr.bf16.mxu1 %v4957_v0  ;;  %4421 = vmatprep.subr.bf16.mxu0 %v4957_v0 }
 0x4f8   :  { %4405 = vmatpush3.bf16.msra.mxu1 %v5041_v43  ;;  %4423 = vmatpush3.bf16.msra.mxu0 %v5103_v18 }
 0x4f9   :  { %4406 = vmatprep.subr.bf16.mxu1 %v4957_v0  ;;  %4424 = vmatprep.subr.bf16.mxu0 %v4957_v0 }
 0x4fc   :  { %4408 = vmatpush3.bf16.msra.mxu1 %v5046_v49  ;;  %4426 = vmatpush3.bf16.msra.mxu0 %v5107_v22 }
 0x4fd   :  { %4433 = vmatprep.subr.bf16.mxu1 %v4957_v0  ;;  %4427 = vmatprep.subr.bf16.mxu0 %v4957_v0 }
 0x500   :  { %4429 = vmatpush3.bf16.msra.mxu0 %v5111_v26 }
 0x501   :  { %4430 = vmatprep.subr.bf16.mxu0 %v4957_v0 }
 0x504   :  { %4432 = vmatpush3.bf16.msra.mxu0 %v5115_v29 }
 0x505   :  { %4457 = vmatprep.subr.bf16.mxu0 %v4957_v0 }
 0x59a   :  { %v867_v56 = vpop.f32.mrb[8].mxu0 }
 0x59b   :  { %v868_v58 = vadd.f32 %v867_v56, %v5076_v52  ;;  %v3455_v59 = vpop.f32.mrb[9].mxu0 }
 0x59d   :  { %v1012_v61 = vrot.slane %v868_v58, 5 }
 0x59f   :  { %v1014_v62 = vadd.f32 %v1012_v61, %v5078_v54 }
 0x5a1   :  { %v2647_v2 = vmul.f32 -1.442695, %v1014_v62 }
 0x5a3   :  { %4832 = vpow2.f32 %v2647_v2 }
 0x5ad   :  { %v4833_v3 = vpop.eup %4832 }
 0x5ae   :  { %v1018_v6 = vadd.f32 1.0, %v4833_v3 }
 0x5b0   :  { %4834 = vrcp.f32 %v1018_v6 }
 0x5b2   :  { %v937_v8 = vpop.f32.mrb[8].mxu1 }
 0x5b3   :  { %v3490_v12 = vpop.f32.mrb[9].mxu1  ;;  %v938_v21 = vadd.f32 %v937_v8, %v5202_v34 }
 0x5ba   :  { %v4835_v14 = vpop.eup %4834  ;;  %v1007_v20 = vpop.f32.mrb[10].mxu0 }
 0x5bb   :  { %v1008_v23 = vadd.f32 %v1007_v20, %v5204_v35  ;;  %v3525_v48 = vpop.f32.mrb[11].mxu0  ;;  %v1022_v24 = vrot.slane %v4835_v14, 3 }
 0x5bd   :  { %v1042_v27 = vadd.f32 %v1008_v23, %v938_v21  ;;  %1026 = vrot.lane.b32.xlu1 %v1022_v24, %s4961_s11  ;;  %1024 = vrot.lane.b32.xlu0 %v1022_v24, %s4960_s0 }
 0x5bf   :  { %v2648_v28 = vmul.f32 -1.442695, %v1042_v27 }
 0x5c1   :  { %4836 = vpow2.f32 %v2648_v28 }
 0x5cb   :  { %v4837_v30 = vpop.eup %4836 }
 0x5cc   :  { %v1046_v32 = vadd.f32 1.0, %v4837_v30 }
 0x5ce   :  { %4838 = vrcp.f32 %v1046_v32 }
 0x5d8   :  { %v4839_v36 = vpop.eup %4838 }
 0x5d9   :  { %1051 = vrot.lane.b32.xlu1 %v4839_v36, %s4961_s11  ;;  %1049 = vrot.lane.b32.xlu0 %v4839_v36, %s4960_s0 }
 0x62f   :  { %v1025_v38 = vpop.permute.xlu0 %1024  ;;  %v1027_v42 = vpop.permute.xlu1 %1026 }
 0x630   :  { %v1028_v40 = vmul.f32 %v1025_v38, %v868_v58  ;;  %v1034_v46 = vsub.f32 1.0, %v1027_v42  ;;  %v1039_v51 = vmul.f32 %v1027_v42, %v5288_v39 }
 0x632   :  { %v1030_v41 = vrot.slane %v1028_v40, 5 }
 0x634   :  { %v1032_v17 = vadd.f32 %v1030_v41, %v5078_v54 }
 0x636   :  { %4840 = vtanh.f32 %v1032_v17 }
 0x640   :  { %v4841_v44 = vpop.eup %4840 }
 0x641   :  { %v1036_v50 = vrot.slane %v4841_v44, 3 }
 0x643   :  { %v1038_v56 = vmul.f32 %v1036_v50, %v1034_v46 }
 0x645   :  { %v1040_v59 = vadd.f32 %v1039_v51, %v1038_v56 }
 0x647   :  { %v5362_v61 = vmul.f32 %v5141_v45, %v1040_v59 }
 0x649   :  { %3559 = vmatmul.mubr.f32.vlgmr.msra.gmra.mrb[10].mxu1 %v5362_v61 }
 0x64a   :  { %4435 = vmatpush3.bf16.msra.mxu1 %v5143_v47  ;;  %3628 = vmatprep.mubr.msk.f32.mxu1 %vm4958_vm0, %v4959_v1 }
 0x64b   :  { %v1050_v58 = vpop.permute.xlu0 %1049  ;;  %4436 = vmatprep.subr.bf16.mxu1 %v4957_v0  ;;  %v1052_v39 = vpop.permute.xlu1 %1051 }
 0x64c   :  { %v1053_v62 = vmul.f32 %v1050_v58, %v938_v21  ;;  %v1056_v3 = vsub.f32 1.0, %v1052_v39  ;;  %v1058_v8 = vmul.f32 %v1052_v39, %v5306_v55 }
 0x64e   :  { %v1054_v2 = vadd.f32 %v1053_v62, %v1008_v23  ;;  %4438 = vmatpush3.bf16.msra.mxu1 %v5150_v53 }
 0x64f   :  { %4439 = vmatprep.subr.bf16.mxu1 %v4957_v0 }
 0x650   :  { %4842 = vtanh.f32 %v1054_v2 }
 0x652   :  { %4441 = vmatpush3.bf16.msra.mxu1 %v5156_v57 }
 0x653   :  { %4442 = vmatprep.subr.bf16.mxu1 %v4957_v0 }
 0x656   :  { %4444 = vmatpush3.bf16.msra.mxu1 %v5160_v60 }
 0x657   :  { %4445 = vmatprep.subr.bf16.mxu1 %v4957_v0 }
 0x65a   :  { %v4843_v6 = vpop.eup %4842  ;;  %4447 = vmatpush3.bf16.msra.mxu1 %v5164_v63 }
 0x65b   :  { %4448 = vmatprep.subr.bf16.mxu1 %v4957_v0  ;;  %v1057_v12 = vmul.f32 %v4843_v6, %v1056_v3 }
 0x65d   :  { %v1059_v14 = vadd.f32 %v1058_v8, %v1057_v12 }
 0x65e   :  { %4450 = vmatpush3.bf16.msra.mxu1 %v5168_v5 }
 0x65f   :  { %v5380_v20 = vmul.f32 %v5141_v45, %v1059_v14  ;;  %4451 = vmatprep.subr.bf16.mxu1 %v4957_v0 }
 0x661   :  { %3594 = vmatmul.mubr.f32.vlgmr.msra.gmra.mrb[12].mxu0 %v5380_v20 }
 0x662   :  { %4453 = vmatpush3.bf16.msra.mxu1 %v5172_v10  ;;  %4459 = vmatpush3.bf16.msra.mxu0 %v5012_v9 }
 0x663   :  { %4454 = vmatprep.subr.bf16.mxu1 %v4957_v0  ;;  %4460 = vmatprep.subr.bf16.mxu0 %v4957_v0 }
 0x664   :  { %3663 = vmatprep.mubr.msk.f32.mxu0 %vm4958_vm0, %v4959_v1 }
 0x666   :  { %4456 = vmatpush3.bf16.msra.mxu1 %v5176_v16  ;;  %4462 = vmatpush3.bf16.msra.mxu0 %v5016_v13 }
 0x667   :  { %4463 = vmatprep.subr.bf16.mxu0 %v4957_v0  ;;  %4481 = vmatprep.subr.bf16.mxu1 %v4957_v0 }
 0x669   :  { %3629 = vmatmul.mubr.f32.vlgmr.msra.gmra.mrb[12].mxu1 %v5362_v61 }
 0x66a   :  { %4465 = vmatpush3.bf16.msra.mxu0 %v5021_v19  ;;  %4483 = vmatpush3.bf16.msra.mxu1 %v5087_v4 }
 0x66b   :  { %4466 = vmatprep.subr.bf16.mxu0 %v4957_v0  ;;  %4484 = vmatprep.subr.bf16.mxu1 %v4957_v0 }
 0x66c   :  { %3698 = vmatprep.mubr.msk.f32.mxu1 %vm4958_vm0, %v4959_v1 }
 0x66e   :  { %4468 = vmatpush3.bf16.msra.mxu0 %v5026_v25  ;;  %4486 = vmatpush3.bf16.msra.mxu1 %v5091_v7 }
 0x66f   :  { %4469 = vmatprep.subr.bf16.mxu0 %v4957_v0  ;;  %4487 = vmatprep.subr.bf16.mxu1 %v4957_v0 }
 0x672   :  { %4471 = vmatpush3.bf16.msra.mxu0 %v5031_v31  ;;  %4489 = vmatpush3.bf16.msra.mxu1 %v5095_v11 }
 0x673   :  { %4472 = vmatprep.subr.bf16.mxu0 %v4957_v0  ;;  %4490 = vmatprep.subr.bf16.mxu1 %v4957_v0 }
 0x676   :  { %4474 = vmatpush3.bf16.msra.mxu0 %v5036_v37  ;;  %4492 = vmatpush3.bf16.msra.mxu1 %v5099_v15 }
 0x677   :  { %4475 = vmatprep.subr.bf16.mxu0 %v4957_v0  ;;  %4493 = vmatprep.subr.bf16.mxu1 %v4957_v0 }
 0x67a   :  { %4477 = vmatpush3.bf16.msra.mxu0 %v5041_v43  ;;  %4495 = vmatpush3.bf16.msra.mxu1 %v5103_v18 }
 0x67b   :  { %4478 = vmatprep.subr.bf16.mxu0 %v4957_v0  ;;  %4496 = vmatprep.subr.bf16.mxu1 %v4957_v0 }
 0x67e   :  { %4480 = vmatpush3.bf16.msra.mxu0 %v5046_v49  ;;  %4498 = vmatpush3.bf16.msra.mxu1 %v5107_v22 }
 0x67f   :  { %4505 = vmatprep.subr.bf16.mxu0 %v4957_v0  ;;  %4499 = vmatprep.subr.bf16.mxu1 %v4957_v0 }
 0x682   :  { %4501 = vmatpush3.bf16.msra.mxu1 %v5111_v26 }
 0x683   :  { %4502 = vmatprep.subr.bf16.mxu1 %v4957_v0 }
 0x686   :  { %4504 = vmatpush3.bf16.msra.mxu1 %v5115_v29 }
 0x687   :  { %4529 = vmatprep.subr.bf16.mxu1 %v4957_v0 }
 0x71c   :  { %v1127_v21 = vpop.f32.mrb[10].mxu1 }
 0x71d   :  { %v1128_v23 = vadd.f32 %v1127_v21, %v5076_v52  ;;  %v3560_v48 = vpop.f32.mrb[11].mxu1 }
 0x71f   :  { %v1272_v24 = vrot.slane %v1128_v23, 4 }
 0x721   :  { %v1274_v27 = vadd.f32 %v1272_v24, %v5078_v54 }
 0x723   :  { %v2649_v28 = vmul.f32 -1.442695, %v1274_v27 }
 0x725   :  { %4844 = vpow2.f32 %v2649_v28 }
 0x72f   :  { %v4845_v30 = vpop.eup %4844 }
 0x730   :  { %v1278_v32 = vadd.f32 1.0, %v4845_v30 }
 0x732   :  { %4846 = vrcp.f32 %v1278_v32 }
 0x734   :  { %v1197_v36 = vpop.f32.mrb[12].mxu0 }
 0x735   :  { %v3595_v38 = vpop.f32.mrb[13].mxu0  ;;  %v1198_v17 = vadd.f32 %v1197_v36, %v5202_v34 }
 0x73c   :  { %v4847_v40 = vpop.eup %4846  ;;  %v1267_v41 = vpop.f32.mrb[12].mxu1 }
 0x73d   :  { %v1268_v42 = vadd.f32 %v1267_v41, %v5204_v35  ;;  %v3630_v44 = vpop.f32.mrb[13].mxu1  ;;  %v1282_v46 = vrot.slane %v4847_v40, 4 }
 0x73f   :  { %v1302_v52 = vadd.f32 %v1268_v42, %v1198_v17  ;;  %1286 = vrot.lane.b32.xlu1 %v1282_v46, %s4961_s11  ;;  %1284 = vrot.lane.b32.xlu0 %v1282_v46, %s4960_s0 }
 0x741   :  { %v2650_v50 = vmul.f32 -1.442695, %v1302_v52 }
 0x743   :  { %4848 = vpow2.f32 %v2650_v50 }
 0x74d   :  { %v4849_v51 = vpop.eup %4848 }
 0x74e   :  { %v1306_v56 = vadd.f32 1.0, %v4849_v51 }
 0x750   :  { %4850 = vrcp.f32 %v1306_v56 }
 0x75a   :  { %v4851_v59 = vpop.eup %4850 }
 0x75b   :  { %1311 = vrot.lane.b32.xlu1 %v4851_v59, %s4961_s11  ;;  %1309 = vrot.lane.b32.xlu0 %v4851_v59, %s4960_s0 }
 0x7b1   :  { %v1285_v58 = vpop.permute.xlu0 %1284  ;;  %v1287_v3 = vpop.permute.xlu1 %1286 }
 0x7b2   :  { %v1288_v62 = vmul.f32 %v1285_v58, %v1128_v23  ;;  %v1294_v8 = vsub.f32 1.0, %v1287_v3  ;;  %v1299_v14 = vmul.f32 %v1287_v3, %v5362_v61 }
 0x7b4   :  { %v1290_v2 = vrot.slane %v1288_v62, 4 }
 0x7b6   :  { %v1292_v39 = vadd.f32 %v1290_v2, %v5078_v54 }
 0x7b8   :  { %4852 = vtanh.f32 %v1292_v39 }
 0x7c2   :  { %v4853_v6 = vpop.eup %4852 }
 0x7c3   :  { %v1296_v12 = vrot.slane %v4853_v6, 4 }
 0x7c5   :  { %v1298_v21 = vmul.f32 %v1296_v12, %v1294_v8 }
 0x7c7   :  { %v1300_v48 = vadd.f32 %v1299_v14, %v1298_v21 }
 0x7c9   :  { %v5436_v24 = vmul.f32 %v5141_v45, %v1300_v48 }
 0x7cb   :  { %3664 = vmatmul.mubr.f32.vlgmr.msra.gmra.mrb[14].mxu0 %v5436_v24 }
 0x7cc   :  { %4507 = vmatpush3.bf16.msra.mxu0 %v5143_v47  ;;  %3733 = vmatprep.mubr.msk.f32.mxu0 %vm4958_vm0, %v4959_v1 }
 0x7cd   :  { %v1310_v23 = vpop.permute.xlu0 %1309  ;;  %4508 = vmatprep.subr.bf16.mxu0 %v4957_v0  ;;  %v1312_v61 = vpop.permute.xlu1 %1311 }
 0x7ce   :  { %v1313_v27 = vmul.f32 %v1310_v23, %v1198_v17  ;;  %v1316_v30 = vsub.f32 1.0, %v1312_v61  ;;  %v1318_v36 = vmul.f32 %v1312_v61, %v5380_v20 }
 0x7d0   :  { %v1314_v28 = vadd.f32 %v1313_v27, %v1268_v42  ;;  %4510 = vmatpush3.bf16.msra.mxu0 %v5150_v53  ;;  %v5499_v42 = vld [vmem:[#allocation2 + $0x101] sm:$0x1] }
 0x7d1   :  { %4511 = vmatprep.subr.bf16.mxu0 %v4957_v0 }
 0x7d2   :  { %4854 = vtanh.f32 %v1314_v28 }
 0x7d4   :  { %4513 = vmatpush3.bf16.msra.mxu0 %v5156_v57 }
 0x7d5   :  { %4514 = vmatprep.subr.bf16.mxu0 %v4957_v0 }
 0x7d8   :  { %4516 = vmatpush3.bf16.msra.mxu0 %v5160_v60 }
 0x7d9   :  { %4517 = vmatprep.subr.bf16.mxu0 %v4957_v0 }
 0x7dc   :  { %v4855_v32 = vpop.eup %4854  ;;  %4519 = vmatpush3.bf16.msra.mxu0 %v5164_v63 }
 0x7dd   :  { %4520 = vmatprep.subr.bf16.mxu0 %v4957_v0  ;;  %v1317_v38 = vmul.f32 %v4855_v32, %v1316_v30 }
 0x7df   :  { %v1319_v40 = vadd.f32 %v1318_v36, %v1317_v38 }
 0x7e0   :  { %4522 = vmatpush3.bf16.msra.mxu0 %v5168_v5 }
 0x7e1   :  { %v5454_v41 = vmul.f32 %v5141_v45, %v1319_v40  ;;  %4523 = vmatprep.subr.bf16.mxu0 %v4957_v0 }
 0x7e3   :  { %3699 = vmatmul.mubr.f32.vlgmr.msra.gmra.mrb[14].mxu1 %v5454_v41 }
 0x7e4   :  { %4525 = vmatpush3.bf16.msra.mxu0 %v5172_v10  ;;  %4531 = vmatpush3.bf16.msra.mxu1 %v5012_v9 }
 0x7e5   :  { %4526 = vmatprep.subr.bf16.mxu0 %v4957_v0  ;;  %4532 = vmatprep.subr.bf16.mxu1 %v4957_v0 }
 0x7e6   :  { %3768 = vmatprep.mubr.msk.f32.mxu1 %vm4958_vm0, %v4959_v1 }
 0x7e8   :  { %4528 = vmatpush3.bf16.msra.mxu0 %v5176_v16  ;;  %4534 = vmatpush3.bf16.msra.mxu1 %v5016_v13 }
 0x7e9   :  { %4535 = vmatprep.subr.bf16.mxu1 %v4957_v0  ;;  %4553 = vmatprep.subr.bf16.mxu0 %v4957_v0 }
 0x7eb   :  { %3734 = vmatmul.mubr.f32.vlgmr.msra.gmra.mrb[16].mxu0 %v5436_v24 }
 0x7ec   :  { %4537 = vmatpush3.bf16.msra.mxu1 %v5021_v19  ;;  %4555 = vmatpush3.bf16.msra.mxu0 %v5087_v4 }
 0x7ed   :  { %4538 = vmatprep.subr.bf16.mxu1 %v4957_v0  ;;  %4556 = vmatprep.subr.bf16.mxu0 %v4957_v0 }
 0x7ee   :  { %3803 = vmatprep.mubr.msk.f32.mxu0 %vm4958_vm0, %v4959_v1 }
 0x7f0   :  { %4540 = vmatpush3.bf16.msra.mxu1 %v5026_v25  ;;  %4558 = vmatpush3.bf16.msra.mxu0 %v5091_v7 }
 0x7f1   :  { %4541 = vmatprep.subr.bf16.mxu1 %v4957_v0  ;;  %4559 = vmatprep.subr.bf16.mxu0 %v4957_v0 }
 0x7f4   :  { %4543 = vmatpush3.bf16.msra.mxu1 %v5031_v31  ;;  %4561 = vmatpush3.bf16.msra.mxu0 %v5095_v11 }
 0x7f5   :  { %4544 = vmatprep.subr.bf16.mxu1 %v4957_v0  ;;  %4562 = vmatprep.subr.bf16.mxu0 %v4957_v0 }
 0x7f8   :  { %4546 = vmatpush3.bf16.msra.mxu1 %v5036_v37  ;;  %4564 = vmatpush3.bf16.msra.mxu0 %v5099_v15 }
 0x7f9   :  { %4547 = vmatprep.subr.bf16.mxu1 %v4957_v0  ;;  %4565 = vmatprep.subr.bf16.mxu0 %v4957_v0 }
 0x7fc   :  { %4549 = vmatpush3.bf16.msra.mxu1 %v5041_v43  ;;  %4567 = vmatpush3.bf16.msra.mxu0 %v5103_v18 }
 0x7fd   :  { %4550 = vmatprep.subr.bf16.mxu1 %v4957_v0  ;;  %4568 = vmatprep.subr.bf16.mxu0 %v4957_v0 }
 0x800   :  { %4552 = vmatpush3.bf16.msra.mxu1 %v5046_v49  ;;  %4570 = vmatpush3.bf16.msra.mxu0 %v5107_v22 }
 0x801   :  { %4577 = vmatprep.subr.bf16.mxu1 %v4957_v0  ;;  %4571 = vmatprep.subr.bf16.mxu0 %v4957_v0 }
 0x804   :  { %4573 = vmatpush3.bf16.msra.mxu0 %v5111_v26 }
 0x805   :  { %4574 = vmatprep.subr.bf16.mxu0 %v4957_v0 }
 0x808   :  { %4576 = vmatpush3.bf16.msra.mxu0 %v5115_v29 }
 0x809   :  { %4601 = vmatprep.subr.bf16.mxu0 %v4957_v0 }
 0x89e   :  { %v1387_v17 = vpop.f32.mrb[14].mxu0 }
 0x89f   :  { %v1388_v44 = vadd.f32 %v5499_v42, %v1387_v17  ;;  %v3665_v46 = vpop.f32.mrb[15].mxu0 }
 0x8a1   :  { %v1532_v52 = vrot.slane %v1388_v44, 3 }
 0x8a3   :  { %v1534_v50 = vadd.f32 %v1532_v52, %v5078_v54 }
 0x8a5   :  { %v2651_v51 = vmul.f32 -1.442695, %v1534_v50 }
 0x8a7   :  { %4856 = vpow2.f32 %v2651_v51 }
 0x8b1   :  { %v4857_v56 = vpop.eup %4856 }
 0x8b2   :  { %v1538_v59 = vadd.f32 1.0, %v4857_v56 }
 0x8b4   :  { %4858 = vrcp.f32 %v1538_v59 }
 0x8b6   :  { %v1457_v58 = vpop.f32.mrb[14].mxu1 }
 0x8b7   :  { %v3700_v62 = vpop.f32.mrb[15].mxu1  ;;  %v1458_v3 = vadd.f32 %v1457_v58, %v5202_v34 }
 0x8be   :  { %v4859_v2 = vpop.eup %4858  ;;  %v1527_v39 = vpop.f32.mrb[16].mxu0 }
 0x8bf   :  { %v1528_v6 = vadd.f32 %v1527_v39, %v5204_v35  ;;  %v3735_v8 = vpop.f32.mrb[17].mxu0  ;;  %v1542_v12 = vrot.slane %v4859_v2, 5 }
 0x8c1   :  { %v1562_v14 = vadd.f32 %v1528_v6, %v1458_v3  ;;  %1546 = vrot.lane.b32.xlu1 %v1542_v12, %s4961_s11  ;;  %1544 = vrot.lane.b32.xlu0 %v1542_v12, %s4960_s0 }
 0x8c3   :  { %v2652_v21 = vmul.f32 -1.442695, %v1562_v14  ;;  %v5577_v14 = vld [vmem:[#allocation2 + $0x209] sm:$0x1] }
 0x8c5   :  { %4860 = vpow2.f32 %v2652_v21 }
 0x8cf   :  { %v4861_v48 = vpop.eup %4860 }
 0x8d0   :  { %v1566_v23 = vadd.f32 1.0, %v4861_v48  ;;  %v5580_v48 = vld [vmem:[#allocation2 + $0x208] sm:$0x1] }
 0x8d2   :  { %4862 = vrcp.f32 %v1566_v23 }
 0x8dc   :  { %v4863_v27 = vpop.eup %4862 }
 0x8dd   :  { %1571 = vrot.lane.b32.xlu1 %v4863_v27, %s4961_s11  ;;  %1569 = vrot.lane.b32.xlu0 %v4863_v27, %s4960_s0 }
 0x933   :  { %v1545_v34 = vpop.permute.xlu0 %1544  ;;  %v1547_v30 = vpop.permute.xlu1 %1546 }
 0x934   :  { %v1548_v28 = vmul.f32 %v1545_v34, %v1388_v44  ;;  %v1554_v36 = vsub.f32 1.0, %v1547_v30  ;;  %v1559_v40 = vmul.f32 %v1547_v30, %v5436_v24 }
 0x936   :  { %v1550_v35 = vrot.slane %v1548_v28, 3 }
 0x938   :  { %v1552_v61 = vadd.f32 %v1550_v35, %v5078_v54 }
 0x93a   :  { %4864 = vtanh.f32 %v1552_v61 }
 0x944   :  { %v4865_v32 = vpop.eup %4864 }
 0x945   :  { %v1556_v38 = vrot.slane %v4865_v32, 5 }
 0x947   :  { %v1558_v17 = vmul.f32 %v1556_v38, %v1554_v36 }
 0x949   :  { %v1560_v46 = vadd.f32 %v1559_v40, %v1558_v17 }
 0x94b   :  { %v5512_v52 = vmul.f32 %v5141_v45, %v1560_v46 }
 0x94d   :  { %3769 = vmatmul.mubr.f32.vlgmr.msra.gmra.mrb[16].mxu1 %v5512_v52 }
 0x94e   :  { %4579 = vmatpush3.bf16.msra.mxu1 %v5143_v47  ;;  %3838 = vmatprep.mubr.msk.f32.mxu1 %vm4958_vm0, %v4959_v1 }
 0x94f   :  { %v1570_v44 = vpop.permute.xlu0 %1569  ;;  %4580 = vmatprep.subr.bf16.mxu1 %v4957_v0  ;;  %v1572_v24 = vpop.permute.xlu1 %1571 }
 0x950   :  { %v1573_v50 = vmul.f32 %v1570_v44, %v1458_v3  ;;  %v1576_v56 = vsub.f32 1.0, %v1572_v24  ;;  %v1578_v58 = vmul.f32 %v1572_v24, %v5454_v41 }
 0x952   :  { %v1574_v51 = vadd.f32 %v1573_v50, %v1528_v6  ;;  %4582 = vmatpush3.bf16.msra.mxu1 %v5150_v53 }
 0x953   :  { %4583 = vmatprep.subr.bf16.mxu1 %v4957_v0 }
 0x954   :  { %4866 = vtanh.f32 %v1574_v51 }
 0x956   :  { %4585 = vmatpush3.bf16.msra.mxu1 %v5156_v57 }
 0x957   :  { %4586 = vmatprep.subr.bf16.mxu1 %v4957_v0 }
 0x95a   :  { %4588 = vmatpush3.bf16.msra.mxu1 %v5160_v60 }
 0x95b   :  { %4589 = vmatprep.subr.bf16.mxu1 %v4957_v0 }
 0x95e   :  { %v4867_v59 = vpop.eup %4866  ;;  %4591 = vmatpush3.bf16.msra.mxu1 %v5164_v63 }
 0x95f   :  { %4592 = vmatprep.subr.bf16.mxu1 %v4957_v0  ;;  %v1577_v62 = vmul.f32 %v4867_v59, %v1576_v56 }
 0x961   :  { %v1579_v2 = vadd.f32 %v1578_v58, %v1577_v62 }
 0x962   :  { %4594 = vmatpush3.bf16.msra.mxu1 %v5168_v5 }
 0x963   :  { %v5530_v39 = vmul.f32 %v5141_v45, %v1579_v2  ;;  %4595 = vmatprep.subr.bf16.mxu1 %v4957_v0 }
 0x965   :  { %3804 = vmatmul.mubr.f32.vlgmr.msra.gmra.mrb[18].mxu0 %v5530_v39 }
 0x966   :  { %4597 = vmatpush3.bf16.msra.mxu1 %v5172_v10  ;;  %4603 = vmatpush3.bf16.msra.mxu0 %v5012_v9 }
 0x967   :  { %4598 = vmatprep.subr.bf16.mxu1 %v4957_v0  ;;  %4604 = vmatprep.subr.bf16.mxu0 %v4957_v0 }
 0x968   :  { %3873 = vmatprep.mubr.msk.f32.mxu0 %vm4958_vm0, %v4959_v1 }
 0x96a   :  { %4600 = vmatpush3.bf16.msra.mxu1 %v5176_v16  ;;  %4606 = vmatpush3.bf16.msra.mxu0 %v5016_v13 }
 0x96b   :  { %4607 = vmatprep.subr.bf16.mxu0 %v4957_v0  ;;  %4625 = vmatprep.subr.bf16.mxu1 %v4957_v0 }
 0x96d   :  { %3839 = vmatmul.mubr.f32.vlgmr.msra.gmra.mrb[18].mxu1 %v5512_v52 }
 0x96e   :  { %4609 = vmatpush3.bf16.msra.mxu0 %v5021_v19  ;;  %4627 = vmatpush3.bf16.msra.mxu1 %v5087_v4 }
 0x96f   :  { %4610 = vmatprep.subr.bf16.mxu0 %v4957_v0  ;;  %4628 = vmatprep.subr.bf16.mxu1 %v4957_v0 }
 0x970   :  { %3908 = vmatprep.mubr.msk.f32.mxu1 %vm4958_vm0, %v4959_v1 }
 0x972   :  { %4612 = vmatpush3.bf16.msra.mxu0 %v5026_v25  ;;  %4630 = vmatpush3.bf16.msra.mxu1 %v5091_v7 }
 0x973   :  { %4613 = vmatprep.subr.bf16.mxu0 %v4957_v0  ;;  %4631 = vmatprep.subr.bf16.mxu1 %v4957_v0 }
 0x976   :  { %4615 = vmatpush3.bf16.msra.mxu0 %v5031_v31  ;;  %4633 = vmatpush3.bf16.msra.mxu1 %v5095_v11 }
 0x977   :  { %4616 = vmatprep.subr.bf16.mxu0 %v4957_v0  ;;  %4634 = vmatprep.subr.bf16.mxu1 %v4957_v0 }
 0x97a   :  { %4618 = vmatpush3.bf16.msra.mxu0 %v5036_v37  ;;  %4636 = vmatpush3.bf16.msra.mxu1 %v5099_v15 }
 0x97b   :  { %4619 = vmatprep.subr.bf16.mxu0 %v4957_v0  ;;  %4637 = vmatprep.subr.bf16.mxu1 %v4957_v0 }
 0x97e   :  { %4621 = vmatpush3.bf16.msra.mxu0 %v5041_v43  ;;  %4639 = vmatpush3.bf16.msra.mxu1 %v5103_v18 }
 0x97f   :  { %4622 = vmatprep.subr.bf16.mxu0 %v4957_v0  ;;  %4640 = vmatprep.subr.bf16.mxu1 %v4957_v0 }
 0x982   :  { %4624 = vmatpush3.bf16.msra.mxu0 %v5046_v49  ;;  %4642 = vmatpush3.bf16.msra.mxu1 %v5107_v22 }
 0x983   :  { %4649 = vmatprep.subr.bf16.mxu0 %v4957_v0  ;;  %4643 = vmatprep.subr.bf16.mxu1 %v4957_v0 }
 0x986   :  { %4645 = vmatpush3.bf16.msra.mxu1 %v5111_v26 }
 0x987   :  { %4646 = vmatprep.subr.bf16.mxu1 %v4957_v0 }
 0x98a   :  { %4648 = vmatpush3.bf16.msra.mxu1 %v5115_v29 }
 0x98b   :  { %4673 = vmatprep.subr.bf16.mxu1 %v4957_v0 }
 0xa20   :  { %v1647_v9 = vpop.f32.mrb[16].mxu1 }
 0xa21   :  { %v1648_v13 = vadd.f32 %v5499_v42, %v1647_v9  ;;  %v3770_v19 = vpop.f32.mrb[17].mxu1 }
 0xa23   :  { %v1792_v25 = vrot.slane %v1648_v13, 2 }
 0xa25   :  { %v1794_v31 = vadd.f32 %v1792_v25, %v5078_v54 }
 0xa27   :  { %v2653_v37 = vmul.f32 -1.442695, %v1794_v31 }
 0xa29   :  { %4868 = vpow2.f32 %v2653_v37 }
 0xa33   :  { %v4869_v43 = vpop.eup %4868 }
 0xa34   :  { %v1798_v49 = vadd.f32 1.0, %v4869_v43 }
 0xa36   :  { %4870 = vrcp.f32 %v1798_v49 }
 0xa38   :  { %v1717_v3 = vpop.f32.mrb[18].mxu0 }
 0xa39   :  { %v3805_v6 = vpop.f32.mrb[19].mxu0  ;;  %v1718_v21 = vadd.f32 %v5577_v14, %v1717_v3 }
 0xa40   :  { %v4871_v8 = vpop.eup %4870  ;;  %v1787_v12 = vpop.f32.mrb[18].mxu1 }
 0xa41   :  { %v1788_v23 = vadd.f32 %v5580_v48, %v1787_v12  ;;  %v3840_v27 = vpop.f32.mrb[19].mxu1  ;;  %v1802_v34 = vrot.slane %v4871_v8, 6 }
 0xa43   :  { %v1822_v28 = vadd.f32 %v1788_v23, %v1718_v21  ;;  %1806 = vrot.lane.b32.xlu1 %v1802_v34, %s4961_s11  ;;  %1804 = vrot.lane.b32.xlu0 %v1802_v34, %s4960_s0 }
 0xa45   :  { %v2654_v35 = vmul.f32 -1.442695, %v1822_v28 }
 0xa47   :  { %4872 = vpow2.f32 %v2654_v35 }
 0xa51   :  { %v4873_v61 = vpop.eup %4872 }
 0xa52   :  { %v1826_v30 = vadd.f32 1.0, %v4873_v61 }
 0xa54   :  { %4874 = vrcp.f32 %v1826_v30 }
 0xa5e   :  { %v4875_v32 = vpop.eup %4874 }
 0xa5f   :  { %1831 = vrot.lane.b32.xlu1 %v4875_v32, %s4961_s11  ;;  %1829 = vrot.lane.b32.xlu0 %v4875_v32, %s4960_s0 }
 0xab5   :  { %v1805_v36 = vpop.permute.xlu0 %1804  ;;  %v1807_v46 = vpop.permute.xlu1 %1806 }
 0xab6   :  { %v1808_v38 = vmul.f32 %v1805_v36, %v1648_v13  ;;  %v1814_v50 = vsub.f32 1.0, %v1807_v46  ;;  %v1819_v24 = vmul.f32 %v1807_v46, %v5512_v52 }
 0xab8   :  { %v1810_v40 = vrot.slane %v1808_v38, 2 }
 0xaba   :  { %v1812_v17 = vadd.f32 %v1810_v40, %v5078_v54 }
 0xabc   :  { %4876 = vtanh.f32 %v1812_v17 }
 0xac6   :  { %v4877_v44 = vpop.eup %4876 }
 0xac7   :  { %v1816_v51 = vrot.slane %v4877_v44, 6 }
 0xac9   :  { %v1818_v56 = vmul.f32 %v1816_v51, %v1814_v50 }
 0xacb   :  { %v1820_v59 = vadd.f32 %v1819_v24, %v1818_v56 }
 0xacd   :  { %v5590_v58 = vmul.f32 %v5141_v45, %v1820_v59 }
 0xacf   :  { %3874 = vmatmul.mubr.f32.vlgmr.msra.gmra.mrb[20].mxu0 %v5590_v58 }
 0xad0   :  { %4651 = vmatpush3.bf16.msra.mxu0 %v5143_v47  ;;  %3943 = vmatprep.mubr.msk.f32.mxu0 %vm4958_vm0, %v4959_v1 }
 0xad1   :  { %v1830_v62 = vpop.permute.xlu0 %1829  ;;  %4652 = vmatprep.subr.bf16.mxu0 %v4957_v0  ;;  %v1832_v52 = vpop.permute.xlu1 %1831 }
 0xad2   :  { %v1833_v2 = vmul.f32 %v1830_v62, %v1718_v21  ;;  %v1836_v13 = vsub.f32 1.0, %v1832_v52  ;;  %v1838_v25 = vmul.f32 %v1832_v52, %v5530_v39  ;;  %v2296_v62 = vld [vmem:[#allocation4 + $0x8] sm:$0xff]  ;;  %v2298_v52 = vld [vmem:[#allocation4 + $0x18] sm:$0xff] }
 0xad4   :  { %v1834_v9 = vadd.f32 %v1833_v2, %v1788_v23  ;;  %4654 = vmatpush3.bf16.msra.mxu0 %v5150_v53  ;;  %v2297_v2 = vld [vmem:[#allocation4 + $0x10] sm:$0xff] }
 0xad5   :  { %4655 = vmatprep.subr.bf16.mxu0 %v4957_v0 }
 0xad6   :  { %4878 = vtanh.f32 %v1834_v9 }
 0xad8   :  { %4657 = vmatpush3.bf16.msra.mxu0 %v5156_v57 }
 0xad9   :  { %4658 = vmatprep.subr.bf16.mxu0 %v4957_v0 }
 0xadc   :  { %4660 = vmatpush3.bf16.msra.mxu0 %v5160_v60 }
 0xadd   :  { %4661 = vmatprep.subr.bf16.mxu0 %v4957_v0 }
 0xae0   :  { %v4879_v19 = vpop.eup %4878  ;;  %4663 = vmatpush3.bf16.msra.mxu0 %v5164_v63 }
 0xae1   :  { %4664 = vmatprep.subr.bf16.mxu0 %v4957_v0  ;;  %v1837_v31 = vmul.f32 %v4879_v19, %v1836_v13  ;;  %v4725_v13 = vpack.c.bf16 %v2298_v52, %v2297_v2  ;;  %v2319_v52 = vld [vmem:[#allocation4 + $0xb0] sm:$0xff] }
 0xae3   :  { %v1839_v37 = vadd.f32 %v1838_v25, %v1837_v31 }
 0xae4   :  { %4666 = vmatpush3.bf16.msra.mxu0 %v5168_v5 }
 0xae5   :  { %v5608_v43 = vmul.f32 %v5141_v45, %v1839_v37  ;;  %4667 = vmatprep.subr.bf16.mxu0 %v4957_v0 }
 0xae7   :  { %3909 = vmatmul.mubr.f32.vlgmr.msra.gmra.mrb[20].mxu1 %v5608_v43 }
 0xae8   :  { %4669 = vmatpush3.bf16.msra.mxu0 %v5172_v10  ;;  %4675 = vmatpush3.bf16.msra.mxu1 %v5087_v4 }
 0xae9   :  { %4670 = vmatprep.subr.bf16.mxu0 %v4957_v0  ;;  %4676 = vmatprep.subr.bf16.mxu1 %v4957_v0 }
 0xaea   :  { %3978 = vmatprep.mubr.msk.f32.mxu1 %vm4958_vm0, %v4959_v1 }
 0xaec   :  { %4672 = vmatpush3.bf16.msra.mxu0 %v5176_v16  ;;  %4678 = vmatpush3.bf16.msra.mxu1 %v5091_v7 }
 0xaed   :  { %4697 = vmatprep.subr.bf16.mxu0 %v4957_v0  ;;  %4679 = vmatprep.subr.bf16.mxu1 %v4957_v0 }
 0xaef   :  { %3944 = vmatmul.mubr.f32.vlgmr.msra.gmra.mrb[22].mxu0 %v5590_v58 }
 0xaf0   :  { %4699 = vmatpush3.bf16.msra.mxu0 %v5143_v47  ;;  %4013 = vmatprep.mubr.msk.f32.mxu0 %vm4958_vm0, %v4959_v1 }
 0xaf1   :  { %4700 = vmatprep.subr.bf16.mxu0 %v4957_v0  ;;  %4681 = vmatpush3.bf16.msra.mxu1 %v5095_v11 }
 0xaf2   :  { %4682 = vmatprep.subr.bf16.mxu1 %v4957_v0 }
 0xaf4   :  { %4702 = vmatpush3.bf16.msra.mxu0 %v5150_v53 }
 0xaf5   :  { %4703 = vmatprep.subr.bf16.mxu0 %v4957_v0  ;;  %4684 = vmatpush3.bf16.msra.mxu1 %v5099_v15 }
 0xaf6   :  { %4685 = vmatprep.subr.bf16.mxu1 %v4957_v0 }
 0xaf8   :  { %4705 = vmatpush3.bf16.msra.mxu0 %v5156_v57 }
 0xaf9   :  { %4706 = vmatprep.subr.bf16.mxu0 %v4957_v0  ;;  %4687 = vmatpush3.bf16.msra.mxu1 %v5103_v18 }
 0xafa   :  { %4688 = vmatprep.subr.bf16.mxu1 %v4957_v0 }
 0xafc   :  { %4708 = vmatpush3.bf16.msra.mxu0 %v5160_v60 }
 0xafd   :  { %4709 = vmatprep.subr.bf16.mxu0 %v4957_v0  ;;  %4690 = vmatpush3.bf16.msra.mxu1 %v5107_v22 }
 0xafe   :  { %4691 = vmatprep.subr.bf16.mxu1 %v4957_v0 }
 0xb00   :  { %4711 = vmatpush3.bf16.msra.mxu0 %v5164_v63 }
 0xb01   :  { %4712 = vmatprep.subr.bf16.mxu0 %v4957_v0  ;;  %4693 = vmatpush3.bf16.msra.mxu1 %v5111_v26 }
 0xb02   :  { %4694 = vmatprep.subr.bf16.mxu1 %v4957_v0 }
 0xb04   :  { %4714 = vmatpush3.bf16.msra.mxu0 %v5168_v5 }
 0xb05   :  { %4715 = vmatprep.subr.bf16.mxu0 %v4957_v0  ;;  %4696 = vmatpush3.bf16.msra.mxu1 %v5115_v29 }
 0xb06   :  { %4721 = vmatprep.subr.bf16.mxu1 %v4957_v0 }
 0xb08   :  { %4717 = vmatpush3.bf16.msra.mxu0 %v5172_v10 }
 0xb09   :  { %4718 = vmatprep.subr.bf16.mxu0 %v4957_v0 }
 0xb0c   :  { %4720 = vmatpush3.bf16.msra.mxu0 %v5176_v16 }
 0xb0d   :  { %4745 = vmatprep.subr.bf16.mxu0 %v4957_v0 }
 0xba2   :  { %v1907_v4 = vpop.f32.mrb[20].mxu0 }
 0xba3   :  { %v1908_v7 = vadd.f32 %v5499_v42, %v1907_v4  ;;  %v3875_v11 = vpop.f32.mrb[21].mxu0 }
 0xba5   :  { %v2052_v15 = vrot.slane %v1908_v7, 1 }
 0xba7   :  { %v2054_v18 = vadd.f32 %v2052_v15, %v5078_v54 }
 0xba9   :  { %v2655_v22 = vmul.f32 -1.442695, %v2054_v18  ;;  %v2299_v18 = vld [vmem:[#allocation4 + $0x20] sm:$0xff] }
 0xbab   :  { %4880 = vpow2.f32 %v2655_v22  ;;  %v2300_v22 = vld [vmem:[#allocation4 + $0x28] sm:$0xff] }
 0xbb5   :  { %v4881_v26 = vpop.eup %4880 }
 0xbb6   :  { %v2058_v29 = vadd.f32 1.0, %v4881_v26 }
 0xbb8   :  { %4882 = vrcp.f32 %v2058_v29  ;;  %v4728_v29 = vpack.c.bf16 %v2300_v22, %v2299_v18  ;;  %v2326_v18 = vld [vmem:[#allocation4 + $0xe8] sm:$0xff]  ;;  %v2327_v22 = vld [vmem:[#allocation4 + $0xf0] sm:$0xff] }
 0xbba   :  { %v1977_v47 = vpop.f32.mrb[20].mxu1 }
 0xbbb   :  { %v3910_v53 = vpop.f32.mrb[21].mxu1  ;;  %v1978_v63 = vadd.f32 %v5577_v14, %v1977_v47 }
 0xbbc   :  { %v2301_v53 = vld [vmem:[#allocation4 + $0x30] sm:$0xff] }
 0xbc2   :  { %v4883_v57 = vpop.eup %4882  ;;  %v2047_v60 = vpop.f32.mrb[22].mxu0 }
 0xbc3   :  { %v2048_v5 = vadd.f32 %v5580_v48, %v2047_v60  ;;  %v3945_v10 = vpop.f32.mrb[23].mxu0  ;;  %v2062_v16 = vrot.slane %v4883_v57, 7  ;;  %v2302_v57 = vld [vmem:[#allocation4 + $0x38] sm:$0xff] }
 0xbc4   :  { %v4731_v60 = vpack.c.bf16 %v2302_v57, %v2301_v53  ;;  %v2306_v10 = vld [vmem:[#allocation4 + $0x58] sm:$0xff]  ;;  %v2658_v57 = vld [vmem:[#allocation4 + $0x80] ss:$0 sm:$0xff] }
 0xbc5   :  { %v2082_v42 = vadd.f32 %v2048_v5, %v1978_v63  ;;  %2064 = vrot.lane.b32.xlu0 %v2062_v16, %s4960_s0 }
 0xbc7   :  { %v2656_v49 = vmul.f32 -1.442695, %v2082_v42  ;;  %v2307_v42 = vld [vmem:[#allocation4 + $0x60] sm:$0xff] }
 0xbc9   :  { %4884 = vpow2.f32 %v2656_v49  ;;  %2066 = vrot.lane.b32.xlu0 %v2062_v16, %s4961_s11  ;;  %v2308_v49 = vld [vmem:[#allocation4 + $0x68] sm:$0xff] }
 0xbd3   :  { %v4885_v3 = vpop.eup %4884 }
 0xbd4   :  { %v2086_v6 = vadd.f32 1.0, %v4885_v3 }
 0xbd6   :  { %4886 = vrcp.f32 %v2086_v6  ;;  %v4740_v6 = vpack.c.bf16 %v2308_v49, %v2307_v42 }
 0xbe0   :  { %v4887_v8 = vpop.eup %4886 }
 0xbe1   :  { %2089 = vrot.lane.b32.xlu1 %v4887_v8, %s4960_s0 }
 0xbe5   :  { %2091 = vrot.lane.b32.xlu1 %v4887_v8, %s4961_s11  ;;  %v2309_v8 = vld [vmem:[#allocation4 + $0x70] sm:$0xff] }
 0xc37   :  { %v2065_v12 = vpop.permute.xlu0 %2064 }
 0xc38   :  { %v2068_v21 = vmul.f32 %v2065_v12, %v1908_v7  ;;  %v2310_v12 = vld [vmem:[#allocation4 + $0x78] sm:$0xff] }
 0xc3a   :  { %v2070_v23 = vrot.slane %v2068_v21, 1  ;;  %v4743_v21 = vpack.c.bf16 %v2310_v12, %v2309_v8 }
 0xc3b   :  { %v2067_v34 = vpop.permute.xlu0 %2066 }
 0xc3c   :  { %v2072_v27 = vadd.f32 %v2070_v23, %v5078_v54  ;;  %v2074_v61 = vsub.f32 1.0, %v2067_v34  ;;  %v2079_v32 = vmul.f32 %v2067_v34, %v5590_v58  ;;  %v2295_v58 = vld [vmem:[#allocation4] sm:$0xff] }
 0xc3d   :  { %v4722_v9 = vpack.c.bf16 %v2296_v62, %v2295_v58 }
 0xc3e   :  { %4888 = vtanh.f32 %v2072_v27 }
 0xc48   :  { %v4889_v28 = vpop.eup %4888 }
 0xc49   :  { %v2076_v35 = vrot.slane %v4889_v28, 7 }
 0xc4b   :  { %v2078_v30 = vmul.f32 %v2076_v35, %v2074_v61  ;;  %v2261_v35 = vrot.slane %v5306_v55, 7 }
 0xc4d   :  { %v2080_v36 = vadd.f32 %v2079_v32, %v2078_v30  ;;  %v2264_v32 = vrot.slane %v5380_v20, 6 }
 0xc4f   :  { %v2081_v38 = vmul.f32 %v5141_v45, %v2080_v36  ;;  %v2267_v36 = vrot.slane %v5454_v41, 5 }
 0xc51   :  { %4014 = vmatmul.mubr.f32.vlgmr.msra.gmra.mrb[24].mxu0 %v2081_v38 }
 0xc52   :  { %4083 = vmatprep.mubr.msk.f32.mxu0 %vm4958_vm0, %v4959_v1 }
 0xc53   :  { %v2090_v40 = vpop.permute.xlu1 %2089 }
 0xc54   :  { %v2093_v17 = vmul.f32 %v2090_v40, %v1978_v63  ;;  %v2303_v63 = vld [vmem:[#allocation4 + $0x40] sm:$0xff] }
 0xc56   :  { %v2094_v46 = vadd.f32 %v2093_v17, %v2048_v5  ;;  %v2305_v5 = vld [vmem:[#allocation4 + $0x50] sm:$0xff]  ;;  %v2270_v17 = vrot.slane %v5530_v39, 4 }
 0xc57   :  { %v2092_v54 = vpop.permute.xlu1 %2091  ;;  %v4737_v16 = vpack.c.bf16 %v2306_v10, %v2305_v5 }
 0xc58   :  { %4890 = vtanh.f32 %v2094_v46  ;;  %v2096_v44 = vsub.f32 1.0, %v2092_v54  ;;  %v2098_v24 = vmul.f32 %v2092_v54, %v5608_v43  ;;  %v2282_v46 = vsel %vm2281_vm4, %v5232_v33, %v2261_v35  ;;  %v2314_v33 = vld [vmem:[#allocation4 + $0x88] sm:$0xff] }
 0xc59   :  { %v2273_v54 = vrot.slane %v5608_v43, 3  ;;  %v2315_v43 = vld [vmem:[#allocation4 + $0x90] sm:$0xff] }
 0xc5a   :  { %v4746_v62 = vpack.c.bf16 %v2315_v43, %v2314_v33  ;;  %v2341_v43 = vld [vmem:[#allocation4 + $0x150] sm:$0xff] }
 0xc5c   :  { %4747 = vmatpush3.bf16.msra.mxu0 %v4746_v62  ;;  %v2342_v62 = vld [vmem:[#allocation4 + $0x158] sm:$0xff] }
 0xc5d   :  { %4748 = vmatprep.subr.bf16.mxu0 %v4957_v0 }
 0xc62   :  { %v4891_v50 = vpop.eup %4890 }
 0xc63   :  { %v2097_v51 = vmul.f32 %v4891_v50, %v2096_v44  ;;  %v2284_v50 = vsel %vm2283_vm5, %v2282_v46, %v2264_v32  ;;  %v2659_v32 = vld [vmem:[#allocation4 + $0x81] ss:$0 sm:$0xff] }
 0xc64   :  { %v2286_v41 = vsel %vm2285_vm6, %v2284_v50, %v2267_v36  ;;  %v2335_v50 = vld [vmem:[#allocation4 + $0x120] sm:$0xff] }
 0xc65   :  { %v2099_v56 = vadd.f32 %v2098_v24, %v2097_v51  ;;  %v2288_v51 = vsel %vm2287_vm7, %v2286_v41, %v2270_v17 }
 0xc67   :  { %v5668_v59 = vmul.f32 %v5141_v45, %v2099_v56  ;;  %v2290_v56 = vsel %vm2289_vm8, %v2288_v51, %v2273_v54  ;;  %v2333_v54 = vld [vmem:[#allocation4 + $0x110] sm:$0xff] }
 0xc68   :  { %v2337_v51 = vld [vmem:[#allocation4 + $0x130] sm:$0xff] }
 0xc69   :  { %3979 = vmatmul.mubr.f32.vlgmr.msra.gmra.mrb[22].mxu1 %v5668_v59  ;;  %v2276_v55 = vrot.slane %v5668_v59, 2 }
 0xc6a   :  { %4048 = vmatprep.mubr.msk.f32.mxu1 %vm4958_vm0, %v4959_v1  ;;  %4723 = vmatpush3.bf16.msra.mxu1 %v4722_v9  ;;  %v2318_v9 = vld [vmem:[#allocation4 + $0xa8] sm:$0xff] }
 0xc6b   :  { %4724 = vmatprep.subr.bf16.mxu1 %v4957_v0  ;;  %v2292_v39 = vsel %vm2291_vm9, %v2290_v56, %v2276_v55 }
 0xc6e   :  { %4726 = vmatpush3.bf16.msra.mxu1 %v4725_v13  ;;  %v4752_v13 = vpack.c.bf16 %v2319_v52, %v2318_v9  ;;  %v2345_v52 = vld [vmem:[#allocation4 + $0x170] sm:$0xff] }
 0xc6f   :  { %4727 = vmatprep.subr.bf16.mxu1 %v4957_v0 }
 0xc72   :  { %4729 = vmatpush3.bf16.msra.mxu1 %v4728_v29  ;;  %v2328_v29 = vld [vmem:[#allocation4 + $0xf8] sm:$0xff] }
 0xc73   :  { %4730 = vmatprep.subr.bf16.mxu1 %v4957_v0 }
 0xc76   :  { %4732 = vmatpush3.bf16.msra.mxu1 %v4731_v60 }
 0xc77   :  { %4733 = vmatprep.subr.bf16.mxu1 %v4957_v0 }
 0xd24   :  { %v2237_v19 = vpop.f32.mrb[24].mxu0 }
 0xd25   :  { %v4015_v25 = vpop.f32.mrb[25].mxu0  ;;  %v2238_v37 = vadd.f32 %v5580_v48, %v2237_v19  ;;  %v2304_v48 = vld [vmem:[#allocation4 + $0x48] sm:$0xff]  ;;  %v2320_v19 = vld [vmem:[#allocation4 + $0xb8] sm:$0xff] }
 0xd3c   :  { %v2167_v31 = vpop.f32.mrb[22].mxu1 }
 0xd3d   :  { %v2168_v4 = vadd.f32 %v5577_v14, %v2167_v31  ;;  %v3980_v7 = vpop.f32.mrb[23].mxu1  ;;  %v4734_v14 = vpack.c.bf16 %v2304_v48, %v2303_v63  ;;  %v2322_v31 = vld [vmem:[#allocation4 + $0xc8] sm:$0xff] }
 0xd3e   :  { %v2324_v7 = vld [vmem:[#allocation4 + $0xd8] sm:$0xff] }
 0xd3f   :  { %v2241_v11 = vadd.f32 %v2238_v37, %v2168_v4  ;;  %4735 = vmatpush3.bf16.msra.mxu1 %v4734_v14 }
 0xd40   :  { %4736 = vmatprep.subr.bf16.mxu1 %v4957_v0 }
 0xd41   :  { %v2657_v15 = vmul.f32 -1.442695, %v2241_v11  ;;  %v2325_v11 = vld [vmem:[#allocation4 + $0xe0] sm:$0xff] }
 0xd43   :  { %4892 = vpow2.f32 %v2657_v15  ;;  %4738 = vmatpush3.bf16.msra.mxu1 %v4737_v16  ;;  %v4761_v15 = vpack.c.bf16 %v2325_v11, %v2324_v7 }
 0xd44   :  { %4739 = vmatprep.subr.bf16.mxu1 %v4957_v0 }
 0xd47   :  { %4741 = vmatpush3.bf16.msra.mxu1 %v4740_v6 }
 0xd48   :  { %4742 = vmatprep.subr.bf16.mxu1 %v4957_v0 }
 0xd4b   :  { %4744 = vmatpush3.bf16.msra.mxu1 %v4743_v21 }
 0xd4c   :  { %4769 = vmatprep.subr.bf16.mxu1 %v4957_v0 }
 0xd4d   :  { %v4893_v26 = vpop.eup %4892 }
 0xd4e   :  { %v2245_v47 = vadd.f32 1.0, %v4893_v26  ;;  %v4764_v26 = vpack.c.bf16 %v2327_v22, %v2326_v18 }
 0xd50   :  { %4894 = vrcp.f32 %v2245_v47  ;;  %v2329_v47 = vld [vmem:[#allocation4 + $0x100] sm:$0xff] }
 0xd51   :  { %v4767_v53 = vpack.c.bf16 %v2329_v47, %v2328_v29 }
 0xd5a   :  { %v4895_v3 = vpop.eup %4894 }
 0xd5b   :  { %2250 = vrot.lane.b32.xlu1 %v4895_v3, %s4961_s11  ;;  %2248 = vrot.lane.b32.xlu0 %v4895_v3, %s4960_s0 }
 0xdcd   :  { %v2249_v23 = vpop.permute.xlu0 %2248  ;;  %v2251_v28 = vpop.permute.xlu1 %2250 }
 0xdce   :  { %v2252_v27 = vmul.f32 %v2249_v23, %v2168_v4  ;;  %v2255_v61 = vsub.f32 1.0, %v2251_v28  ;;  %v2257_v38 = vmul.f32 %v2251_v28, %v5668_v59  ;;  %v2316_v59 = vld [vmem:[#allocation4 + $0x98] sm:$0xff] }
 0xdd0   :  { %v2253_v34 = vadd.f32 %v2252_v27, %v2238_v37  ;;  %v2323_v37 = vld [vmem:[#allocation4 + $0xd0] sm:$0xff] }
 0xdd1   :  { %v4758_v4 = vpack.c.bf16 %v2323_v37, %v2322_v31  ;;  %v2661_v37 = vld [vmem:[#allocation4 + $0x108] ss:$0 sm:$0xff] }
 0xdd2   :  { %4896 = vtanh.f32 %v2253_v34 }
 0xddc   :  { %v4897_v30 = vpop.eup %4896 }
 0xddd   :  { %v2256_v40 = vmul.f32 %v4897_v30, %v2255_v61 }
 0xddf   :  { %v2258_v44 = vadd.f32 %v2257_v38, %v2256_v40  ;;  %v2660_v38 = vld [vmem:[#allocation4 + $0x82] ss:$0 sm:$0xff] }
 0xde1   :  { %v2259_v20 = vmul.f32 %v5141_v45, %v2258_v44  ;;  %v2317_v45 = vld [vmem:[#allocation4 + $0xa0] sm:$0xff]  ;;  %v2334_v44 = vld [vmem:[#allocation4 + $0x118] sm:$0xff] }
 0xde2   :  { %v4749_v2 = vpack.c.bf16 %v2317_v45, %v2316_v59  ;;  %v4770_v55 = vpack.c.bf16 %v2334_v44, %v2333_v54  ;;  %v4782_v59 = vpack.c.bf16 %v2342_v62, %v2341_v43  ;;  %v2343_v45 = vld [vmem:[#allocation4 + $0x160] sm:$0xff] }
 0xde3   :  { %v2279_v24 = vrot.slane %v2259_v20, 1  ;;  %v2336_v20 = vld [vmem:[#allocation4 + $0x128] sm:$0xff] }
 0xde4   :  { %4750 = vmatpush3.bf16.msra.mxu0 %v4749_v2  ;;  %v4773_v41 = vpack.c.bf16 %v2336_v20, %v2335_v50  ;;  %v2344_v2 = vld [vmem:[#allocation4 + $0x168] sm:$0xff] }
 0xde5   :  { %v2294_v58 = vsel %vm2293_vm10, %v2292_v39, %v2279_v24  ;;  %4751 = vmatprep.subr.bf16.mxu0 %v4957_v0  ;;  %v2338_v24 = vld [vmem:[#allocation4 + $0x138] sm:$0xff]  ;;  %v2339_v39 = vld [vmem:[#allocation4 + $0x140] sm:$0xff]  ;;  %v4785_v9 = vpack.c.bf16 %v2344_v2, %v2343_v45 }
 0xde6   :  { %4049 = vmatmul.mubr.f32.vlgmr.msra.gmra.mrb[24].mxu1 %v2294_v58  ;;  %v4776_v56 = vpack.c.bf16 %v2338_v24, %v2337_v51  ;;  %v2340_v58 = vld [vmem:[#allocation4 + $0x148] sm:$0xff] }
 0xde7   :  { %4118 = vmatprep.mubr.msk.f32.mxu1 %vm4958_vm0, %v4959_v1  ;;  %v2321_v1 = vld [vmem:[#allocation4 + $0xc0] sm:$0xff]  ;;  %4771 = vmatpush3.bf16.msra.mxu1 %v4770_v55  ;;  %v4779_v33 = vpack.c.bf16 %v2340_v58, %v2339_v39 }
 0xde8   :  { %4753 = vmatpush3.bf16.msra.mxu0 %v4752_v13  ;;  %v4755_v25 = vpack.c.bf16 %v2321_v1, %v2320_v19  ;;  %4772 = vmatprep.subr.bf16.mxu1 %v4957_v0  ;;  %v2346_v13 = vld [vmem:[#allocation4 + $0x178] sm:$0xff]  ;;  %v2347_v1 = vld [vmem:[#allocation4 + $0x180] sm:$0xff] }
 0xde9   :  { %4754 = vmatprep.subr.bf16.mxu0 %v4957_v0  ;;  %v4788_v19 = vpack.c.bf16 %v2346_v13, %v2345_v52 }
 0xdeb   :  { %4774 = vmatpush3.bf16.msra.mxu1 %v4773_v41 }
 0xdec   :  { %4756 = vmatpush3.bf16.msra.mxu0 %v4755_v25  ;;  %4775 = vmatprep.subr.bf16.mxu1 %v4957_v0  ;;  %v2348_v25 = vld [vmem:[#allocation4 + $0x188] sm:$0xff] }
 0xded   :  { %4757 = vmatprep.subr.bf16.mxu0 %v4957_v0  ;;  %v4791_v31 = vpack.c.bf16 %v2348_v25, %v2347_v1 }
 0xdef   :  { %4777 = vmatpush3.bf16.msra.mxu1 %v4776_v56 }
 0xdf0   :  { %4759 = vmatpush3.bf16.msra.mxu0 %v4758_v4  ;;  %4778 = vmatprep.subr.bf16.mxu1 %v4957_v0 }
 0xdf1   :  { %4760 = vmatprep.subr.bf16.mxu0 %v4957_v0 }
 0xdf3   :  { %4780 = vmatpush3.bf16.msra.mxu1 %v4779_v33 }
 0xdf4   :  { %4762 = vmatpush3.bf16.msra.mxu0 %v4761_v15  ;;  %4781 = vmatprep.subr.bf16.mxu1 %v4957_v0 }
 0xdf5   :  { %4763 = vmatprep.subr.bf16.mxu0 %v4957_v0 }
 0xdf7   :  { %4783 = vmatpush3.bf16.msra.mxu1 %v4782_v59 }
 0xdf8   :  { %4765 = vmatpush3.bf16.msra.mxu0 %v4764_v26  ;;  %4784 = vmatprep.subr.bf16.mxu1 %v4957_v0 }
 0xdf9   :  { %4766 = vmatprep.subr.bf16.mxu0 %v4957_v0 }
 0xdfb   :  { %4786 = vmatpush3.bf16.msra.mxu1 %v4785_v9 }
 0xdfc   :  { %4768 = vmatpush3.bf16.msra.mxu0 %v4767_v53  ;;  %4787 = vmatprep.subr.bf16.mxu1 %v4957_v0 }
 0xdff   :  { %4789 = vmatpush3.bf16.msra.mxu1 %v4788_v19 }
 0xe00   :  { %4790 = vmatprep.subr.bf16.mxu1 %v4957_v0 }
 0xe03   :  { %4792 = vmatpush3.bf16.msra.mxu1 %v4791_v31 }
 0xeb9   :  { %v2420_v60 = vpop.f32.mrb[24].mxu1 }
 0xeba   :  { %v2421_v63 = vadd.f32 %v2658_v57, %v2420_v60  ;;  %v4050_v48 = vpop.f32.mrb[25].mxu1 }
 0xebc   :  { %v2424_v14 = vrot.slane %v2421_v63, 4 }
 0xebe   :  { %v2425_v5 = vadd.f32 %v2424_v14, %v2421_v63 }
 0xec0   :  { %v2426_v10 = vrot.slane %v2425_v5, 2 }
 0xec2   :  { %v2427_v16 = vadd.f32 %v2426_v10, %v2425_v5 }
 0xec4   :  { %v2428_v42 = vrot.slane %v2427_v16, 1 }
 0xec6   :  { %v2429_v49 = vadd.f32 %v2428_v42, %v2427_v16 }
 0xec8   :  { %v2431_v3 = vmul.f32 0.125, %v2429_v49 }
 0xeca   :  { %v2432_v6 = vsub.f32 %v2421_v63, %v2431_v3  ;;  %v2662_v3 = vld [vmem:[#allocation4 + $0x109] ss:$0 sm:$0xff] }
 0xecc   :  { %v2433_v8 = vmul.f32 %v2432_v6, %v2432_v6 }
 0xece   :  { %v2434_v12 = vrot.slane %v2433_v8, 4 }
 0xed0   :  { %v2435_v21 = vadd.f32 %v2434_v12, %v2433_v8  ;;  %v2663_v8 = vld [vmem:[#allocation4 + $0x10a] ss:$0 sm:$0xff] }
 0xed2   :  { %v2436_v23 = vrot.slane %v2435_v21, 2 }
 0xed4   :  { %v2437_v27 = vadd.f32 %v2436_v23, %v2435_v21 }
 0xed6   :  { %v2438_v34 = vrot.slane %v2437_v27, 1 }
 0xed8   :  { %v2439_v28 = vadd.f32 %v2438_v34, %v2437_v27  ;;  %v2664_v27 = vld [vmem:[#allocation4 + $0x190] ss:$0 sm:$0xff] }
 0xeda   :  { %v2440_v35 = vmul.f32 0.125, %v2439_v28 }
 0xedc   :  { %v2441_v61 = vadd.f32 1e-05, %v2440_v35 }
 0xede   :  { %4898 = vrsqrt.f32 %v2441_v61 }
 0xee8   :  { %v4899_v30 = vpop.eup %4898 }
 0xee9   :  { %v2443_v36 = vmul.f32 %v4899_v30, %v2432_v6 }
 0xeeb   :  { %v2448_v40 = vmul.f32 %v2659_v32, %v2443_v36 }
 0xeed   :  { %v2453_v17 = vadd.f32 %v2660_v38, %v2448_v40 }
 0xeef   :  { %v2454_v46 = vmax.f32 %v2453_v17, 0.0 }
 0xef1   :  { %4084 = vmatmul.mubr.f32.vlgmr.msra.gmra.mrb[26].mxu0 %v2454_v46 }
 0xfc4   :  { %v2525_v4 = vpop.f32.mrb[26].mxu0 }
 0xfc5   :  { %v2526_v7 = vadd.f32 %v2661_v37, %v2525_v4  ;;  %v4085_v11 = vpop.f32.mrb[27].mxu0 }
 0xfc7   :  { %v2529_v15 = vrot.slane %v2526_v7, 4 }
 0xfc9   :  { %v2530_v18 = vadd.f32 %v2529_v15, %v2526_v7 }
 0xfcb   :  { %v2531_v22 = vrot.slane %v2530_v18, 2 }
 0xfcd   :  { %v2532_v26 = vadd.f32 %v2531_v22, %v2530_v18 }
 0xfcf   :  { %v2533_v29 = vrot.slane %v2532_v26, 1 }
 0xfd1   :  { %v2534_v47 = vadd.f32 %v2533_v29, %v2532_v26 }
 0xfd3   :  { %v2535_v53 = vmul.f32 0.125, %v2534_v47 }
 0xfd5   :  { %v2536_v57 = vsub.f32 %v2526_v7, %v2535_v53 }
 0xfd7   :  { %v2537_v60 = vmul.f32 %v2536_v57, %v2536_v57 }
 0xfd9   :  { %v2538_v63 = vrot.slane %v2537_v60, 4 }
 0xfdb   :  { %v2539_v48 = vadd.f32 %v2538_v63, %v2537_v60 }
 0xfdd   :  { %v2540_v0 = vrot.slane %v2539_v48, 2 }
 0xfdf   :  { %v2541_v14 = vadd.f32 %v2540_v0, %v2539_v48 }
 0xfe1   :  { %v2542_v5 = vrot.slane %v2541_v14, 1 }
 0xfe3   :  { %v2543_v10 = vadd.f32 %v2542_v5, %v2541_v14 }
 0xfe5   :  { %v2544_v16 = vmul.f32 0.125, %v2543_v10 }
 0xfe7   :  { %v2545_v42 = vadd.f32 1e-05, %v2544_v16 }
 0xfe9   :  { %4900 = vrsqrt.f32 %v2545_v42 }
 0xff3   :  { %v4901_v49 = vpop.eup %4900 }
 0xff4   :  { %v2547_v6 = vmul.f32 %v4901_v49, %v2536_v57 }
 0xff6   :  { %v2552_v12 = vmul.f32 %v2662_v3, %v2547_v6 }
 0xff8   :  { %v2557_v21 = vadd.f32 %v2663_v8, %v2552_v12 }
 0xffa   :  { %v2558_v23 = vmax.f32 %v2557_v21, 0.0 }
 0xffc   :  { %4119 = vmatmul.mubr.f32.vlgmr.msra.gmra.mrb[26].mxu1 %v2558_v23 }
0x10cf   :  { %v2629_v34 = vpop.f32.mrb[26].mxu1 }
0x10d0   :  { %v2630_v28 = vadd.f32 %v2664_v27, %v2629_v34  ;;  %v4120_v35 = vpop.f32.mrb[27].mxu1 }
0x10d2   :  { %2633 = vst [vmem:[%s5716_s3] sm:$0xff] %v2630_v28 }
0x10d3   :  { %2638 = vsyncpa [#allocation3], 1 }
0x10d4   :  { %2639 = vsyncpa [#allocation5], 1 }

</bundles_post_ra>
